<compile_context>
chip_gen: v7x
topology: tpu7x:2x2x1
jax: 0.10.0
libtpu: 0.0.40
codegen_flags: <defaults>
</compile_context>

<pallas_src>
import functools

import jax
import jax.numpy as jnp
from jax.experimental import pallas as pl
from jax.experimental.pallas import tpu as pltpu

EPS = 1e-9


def _round_up(x, m):
    return (x + m - 1) // m * m


def _residual_unit_kernel(xm_ref, xh_ref, a1_ref, ia1_ref, w1_ref, b1_ref,
                          a2_ref, ia2_ref, w2_ref, b2_ref, o_ref,
                          s1_ref, col_ref, *, dilation, ksize, pad, tl, halo):
    """Fused snake -> dilated conv(k=7) -> snake -> conv(k=1) -> residual add.

    Per grid step (b, i):
      xm_ref : (1, C, TL)    main tile of the pre-padded input (f32)
      xh_ref : (1, C, HALO)  right halo tile (next lane-aligned block)
      a*/ia*/b* : (C, 1)     snake alphas, 1/(alpha+eps), conv biases (f32)
      w1_ref : (C, 7*C)      weight-normed conv1 weight, im2col layout, bf16
      w2_ref : (C, C)        weight-normed 1x1 conv weight, bf16
      o_ref  : (1, C, TL)    output tile (f32)
      s1_ref : (C, TL+HALO)  bf16 scratch: snake1 activations (main ++ halo)
      col_ref: (7*C, TL)     bf16 scratch: im2col matrix for conv1
    """
    del halo  # implicit in the scratch shapes
    C = o_ref.shape[1]
    xm = xm_ref[0]                      # (C, TL)   f32
    xh = xh_ref[0]                      # (C, HALO) f32
    a1 = a1_ref[...]
    ia1 = ia1_ref[...]

    # snake1 in f32 (snake(0) == 0, so the wrapper's zero padding is equivalent
    # to PyTorch's conv zero-padding of the snake output).  Stored once, as
    # bf16, into a contiguous scratch so the dilated taps can window it.
    s1_ref[:, :tl] = (xm + ia1 * jnp.sin(a1 * xm) ** 2).astype(s1_ref.dtype)
    s1_ref[:, tl:] = (xh + ia1 * jnp.sin(a1 * xh) ** 2).astype(s1_ref.dtype)

    # im2col: tap k contributes rows [k*C, (k+1)*C) shifted by k*dilation lanes.
    for k in range(ksize):
        col_ref[k * C:(k + 1) * C, :] = s1_ref[:, k * dilation:k * dilation + tl]

    # Dilated conv (k=7) as ONE bf16 MXU matmul with f32 accumulation.
    h = jnp.dot(w1_ref[...], col_ref[...], preferred_element_type=jnp.float32)
    h = h + b1_ref[...]

    # snake2 (f32), then 1x1 conv as a second bf16 matmul.
    a2 = a2_ref[...]
    ia2 = ia2_ref[...]
    s2 = (h + ia2 * jnp.sin(a2 * h) ** 2).astype(w2_ref.dtype)
    y = jnp.dot(w2_ref[...], s2, preferred_element_type=jnp.float32) + b2_ref[...]

    # Residual add.  The x rows of this tile live at padded offsets
    # [pad, pad + TL): the last `pad` columns come from the halo block.
    o_ref[0, :, :tl - pad] = y[:, :tl - pad] + xm[:, pad:]
    if pad > 0:
        o_ref[0, :, tl - pad:] = y[:, tl - pad:] + xh[:, :pad]


def _weight_norm(v, g):
    """PyTorch nn.utils.weight_norm for Conv1d: norm over (in, k) per out-ch."""
    norm = jnp.sqrt(jnp.sum(v * v, axis=(1, 2), keepdims=True))
    return g * v / norm


def residual_unit_forward(x_ncl, params, dilation, *, ksize=7, tl_target=512):
    """x_ncl: (B, C, L) float32, PyTorch NCL layout. Returns (B, C, L)."""
    B, C, L = x_ncl.shape
    pad = (ksize - 1) * dilation // 2            # == 3 * dilation for ksize=7

    # L-tiling: the halo must cover the conv receptive-field overhang (2*pad)
    # and be lane-aligned (128); the tile is a multiple of the halo so the halo
    # window is itself a lane-aligned block of the padded array.
    halo = _round_up(max(2 * pad, 1), 128)
    tl = max(halo, _round_up(min(tl_target, L), halo))
    n_tiles = -(-L // tl)
    lp = n_tiles * tl + halo
    ratio = tl // halo

    # ---- one-time glue: weight norm, im2col weight layout, bf16 casts ----
    w1 = _weight_norm(params["v1"], params["g1"])              # (C, C, 7)
    w2 = _weight_norm(params["v2"], params["g2"])              # (C, C, 1)
    # im2col layout: w1_col[co, k*C + ci] = w1[co, ci, k]
    w1_col = jnp.transpose(w1, (0, 2, 1)).reshape(C, ksize * C).astype(jnp.bfloat16)
    w2_mat = w2[:, :, 0].astype(jnp.bfloat16)                  # (C, C)
    a1 = params["alpha1"].reshape(C, 1)
    a2 = params["alpha2"].reshape(C, 1)
    ia1 = 1.0 / (a1 + EPS)                                     # precomputed recip
    ia2 = 1.0 / (a2 + EPS)
    b1 = params["b1"].reshape(C, 1)
    b2 = params["b2"].reshape(C, 1)

    # Zero-pad L once in HBM: `pad` zeros on the left (conv padding) plus
    # enough on the right for the last tile + halo.  No in-kernel zeroing.
    xp = jnp.pad(x_ncl, ((0, 0), (0, 0), (pad, lp - pad - L)))

    kernel = functools.partial(_residual_unit_kernel, dilation=dilation,
                               ksize=ksize, pad=pad, tl=tl, halo=halo)

    def _param_spec(shape):
        # Small parameter: full-shape block, constant index -> stays resident.
        return pl.BlockSpec(shape, lambda b, i: (0, 0))

    out = pl.pallas_call(
        kernel,
        out_shape=jax.ShapeDtypeStruct((B, C, n_tiles * tl), jnp.float32),
        grid=(B, n_tiles),
        in_specs=[
            pl.BlockSpec((1, C, tl), lambda b, i: (b, 0, i)),                  # main tile
            pl.BlockSpec((1, C, halo), lambda b, i: (b, 0, (i + 1) * ratio)),  # halo tile
            _param_spec((C, 1)),                  # alpha1
            _param_spec((C, 1)),                  # 1/(alpha1+eps)
            _param_spec((C, ksize * C)),          # conv1 weight (im2col, bf16)
            _param_spec((C, 1)),                  # bias1
            _param_spec((C, 1)),                  # alpha2
            _param_spec((C, 1)),                  # 1/(alpha2+eps)
            _param_spec((C, C)),                  # conv2 weight (bf16)
            _param_spec((C, 1)),                  # bias2
        ],
        out_specs=pl.BlockSpec((1, C, tl), lambda b, i: (b, 0, i)),
        scratch_shapes=[
            pltpu.VMEM((C, tl + halo), jnp.bfloat16),     # snake1 activations
            pltpu.VMEM((ksize * C, tl), jnp.bfloat16),    # im2col matrix
        ],
        compiler_params=pltpu.CompilerParams(
            dimension_semantics=("parallel", "parallel"),
            vmem_limit_bytes=48 * 1024 * 1024),
        cost_estimate=pl.CostEstimate(
            flops=2 * B * n_tiles * tl * C * C * (ksize + 1),
            transcendentals=2 * B * n_tiles * tl * C,
            bytes_accessed=4 * B * C * (lp + n_tiles * (tl + halo))),
        # input_output_aliases skipped on purpose: the padded input (B, C, lp)
        # and the output (B, C, n_tiles*tl) have different shapes.
    )(xp, xp, a1, ia1, w1_col, b1, a2, ia2, w2_mat, b2)

    return out[:, :, :L]


def _ref_forward(x_ncl, params, dilation):
    """Pure-JAX f32 reference (NCL layout) for correctness checking."""
    def snake(x, alpha):
        return x + (1.0 / (alpha + EPS)) * jnp.sin(alpha * x) ** 2

    w1 = _weight_norm(params["v1"], params["g1"])
    w2 = _weight_norm(params["v2"], params["g2"])
    pad = 6 * dilation // 2

    s1 = snake(x_ncl, params["alpha1"])
    h = jax.lax.conv_general_dilated(
        s1, w1, window_strides=(1,), padding=[(pad, pad)],
        rhs_dilation=(dilation,), dimension_numbers=("NCH", "OIH", "NCH"))
    h = h + params["b1"][None, :, None]
    s2 = snake(h, params["alpha2"])
    y = jax.lax.conv_general_dilated(
        s2, w2, window_strides=(1,), padding=[(0, 0)],
        dimension_numbers=("NCH", "OIH", "NCH"))
    y = y + params["b2"][None, :, None]
    crop = (x_ncl.shape[-1] - y.shape[-1]) // 2
    xc = x_ncl[..., crop:x_ncl.shape[-1] - crop] if crop > 0 else x_ncl
    return xc + y


def init_params(key, dim, ksize=7):
    ks = jax.random.split(key, 6)
    return {
        "alpha1": jnp.ones((1, dim, 1), jnp.float32),
        "alpha2": jnp.ones((1, dim, 1), jnp.float32),
        "v1": jax.random.normal(ks[0], (dim, dim, ksize), jnp.float32) * 0.1,
        "g1": jax.random.normal(ks[1], (dim, 1, 1), jnp.float32) * 0.5 + 1.0,
        "b1": jax.random.normal(ks[2], (dim,), jnp.float32) * 0.1,
        "v2": jax.random.normal(ks[3], (dim, dim, 1), jnp.float32) * 0.1,
        "g2": jax.random.normal(ks[4], (dim, 1, 1), jnp.float32) * 0.5 + 1.0,
        "b2": jax.random.normal(ks[5], (dim,), jnp.float32) * 0.1,
    }


if __name__ == "__main__":
    B, C, L = 2, 16, 16          # dim=16 (ResidualUnit default), small seq
    dilation = 3

    key = jax.random.PRNGKey(0)
    k_x, k_p = jax.random.split(key)
    x = jax.random.normal(k_x, (B, C, L), jnp.float32)
    params = init_params(k_p, C)

    out = jax.block_until_ready(residual_unit_forward(x, params, dilation))
    ref = jax.block_until_ready(_ref_forward(x, params, dilation))

    assert out.shape == x.shape
    err = float(jnp.max(jnp.abs(out - ref)))
    # bf16 MXU matmuls -> bf16-appropriate tolerance vs. the pure-f32 reference.
    assert jnp.allclose(out, ref, atol=5e-2, rtol=5e-2), f"max err {err}"
    print("KERNEL_OK")
</pallas_src>

<mosaic_0001>
module attributes {stable_mosaic.version = 11 : i64} {
  func.func @_residual_unit_kernel(%arg0: i32, %arg1: i32, %arg2: memref<1x16x128xf32, #tpu.memory_space<vmem>>, %arg3: memref<1x16x128xf32, #tpu.memory_space<vmem>>, %arg4: memref<16x1xf32, #tpu.memory_space<vmem>>, %arg5: memref<16x1xf32, #tpu.memory_space<vmem>>, %arg6: memref<16x112xbf16, #tpu.memory_space<vmem>>, %arg7: memref<16x1xf32, #tpu.memory_space<vmem>>, %arg8: memref<16x1xf32, #tpu.memory_space<vmem>>, %arg9: memref<16x1xf32, #tpu.memory_space<vmem>>, %arg10: memref<16x16xbf16, #tpu.memory_space<vmem>>, %arg11: memref<16x1xf32, #tpu.memory_space<vmem>>, %arg12: memref<1x16x128xf32, #tpu.memory_space<vmem>>, %arg13: memref<16x256xbf16, #tpu.memory_space<vmem>>, %arg14: memref<112x128xbf16, #tpu.memory_space<vmem>>) attributes {dimension_semantics = [#tpu.dimension_semantics<parallel>, #tpu.dimension_semantics<parallel>], iteration_bounds = array<i64: 2, 1>, scalar_prefetch = 0 : i64, scratch_operands = 2 : i64, tpu.core_type = #tpu.core_type<tc>, window_params = [{transform_indices = @transform_0, window_bounds = array<i64: 1, 16, 128>}, {transform_indices = @transform_1, window_bounds = array<i64: 1, 16, 128>}, {pipeline_mode = #tpu.pipeline_mode<synchronous>, transform_indices = @transform_2, window_bounds = array<i64: 16, 1>}, {pipeline_mode = #tpu.pipeline_mode<synchronous>, transform_indices = @transform_3, window_bounds = array<i64: 16, 1>}, {pipeline_mode = #tpu.pipeline_mode<synchronous>, transform_indices = @transform_4, window_bounds = array<i64: 16, 112>}, {pipeline_mode = #tpu.pipeline_mode<synchronous>, transform_indices = @transform_5, window_bounds = array<i64: 16, 1>}, {pipeline_mode = #tpu.pipeline_mode<synchronous>, transform_indices = @transform_6, window_bounds = array<i64: 16, 1>}, {pipeline_mode = #tpu.pipeline_mode<synchronous>, transform_indices = @transform_7, window_bounds = array<i64: 16, 1>}, {pipeline_mode = #tpu.pipeline_mode<synchronous>, transform_indices = @transform_8, window_bounds = array<i64: 16, 16>}, {pipeline_mode = #tpu.pipeline_mode<synchronous>, transform_indices = @transform_9, window_bounds = array<i64: 16, 1>}, {transform_indices = @transform_10, window_bounds = array<i64: 1, 16, 128>}]} {
    %c0 = arith.constant 0 : index
    %c0_0 = arith.constant 0 : index
    %c0_1 = arith.constant 0 : index
    %0 = vector.load %arg2[%c0, %c0_0, %c0_1] : memref<1x16x128xf32, #tpu.memory_space<vmem>>, vector<1x16x128xf32>
    %1 = vector.shape_cast %0 : vector<1x16x128xf32> to vector<16x128xf32>
    %c0_2 = arith.constant 0 : index
    %c0_3 = arith.constant 0 : index
    %c0_4 = arith.constant 0 : index
    %2 = vector.load %arg3[%c0_2, %c0_3, %c0_4] : memref<1x16x128xf32, #tpu.memory_space<vmem>>, vector<1x16x128xf32>
    %3 = vector.shape_cast %2 : vector<1x16x128xf32> to vector<16x128xf32>
    %c0_5 = arith.constant 0 : index
    %c0_6 = arith.constant 0 : index
    %4 = vector.load %arg4[%c0_5, %c0_6] : memref<16x1xf32, #tpu.memory_space<vmem>>, vector<16x1xf32>
    %c0_7 = arith.constant 0 : index
    %c0_8 = arith.constant 0 : index
    %5 = vector.load %arg5[%c0_7, %c0_8] : memref<16x1xf32, #tpu.memory_space<vmem>>, vector<16x1xf32>
    %6 = vector.broadcast %4 : vector<16x1xf32> to vector<16x128xf32>
    %7 = arith.mulf %6, %1 : vector<16x128xf32>
    %8 = math.sin %7 : vector<16x128xf32>
    %9 = arith.mulf %8, %8 : vector<16x128xf32>
    %10 = vector.broadcast %5 : vector<16x1xf32> to vector<16x128xf32>
    %11 = arith.mulf %10, %9 : vector<16x128xf32>
    %12 = arith.addf %1, %11 : vector<16x128xf32>
    %13 = arith.truncf %12 : vector<16x128xf32> to vector<16x128xbf16>
    %c0_9 = arith.constant 0 : index
    %c0_10 = arith.constant 0 : index
    %14 = vector.load %arg13[%c0_9, %c0_10] : memref<16x256xbf16, #tpu.memory_space<vmem>>, vector<16x128xbf16>
    tpu.vector_store %arg13[%c0_9, %c0_10], %13 {strides = array<i32>} : memref<16x256xbf16, #tpu.memory_space<vmem>>, vector<16x128xbf16>,
    %15 = vector.broadcast %4 : vector<16x1xf32> to vector<16x128xf32>
    %16 = arith.mulf %15, %3 : vector<16x128xf32>
    %17 = math.sin %16 : vector<16x128xf32>
    %18 = arith.mulf %17, %17 : vector<16x128xf32>
    %19 = vector.broadcast %5 : vector<16x1xf32> to vector<16x128xf32>
    %20 = arith.mulf %19, %18 : vector<16x128xf32>
    %21 = arith.addf %3, %20 : vector<16x128xf32>
    %22 = arith.truncf %21 : vector<16x128xf32> to vector<16x128xbf16>
    %c0_11 = arith.constant 0 : index
    %c128 = arith.constant 128 : index
    %23 = vector.load %arg13[%c0_11, %c128] : memref<16x256xbf16, #tpu.memory_space<vmem>>, vector<16x128xbf16>
    tpu.vector_store %arg13[%c0_11, %c128], %22 {strides = array<i32>} : memref<16x256xbf16, #tpu.memory_space<vmem>>, vector<16x128xbf16>,
    %c0_12 = arith.constant 0 : index
    %c0_13 = arith.constant 0 : index
    %24 = vector.load %arg13[%c0_12, %c0_13] : memref<16x256xbf16, #tpu.memory_space<vmem>>, vector<16x128xbf16>
    %c0_14 = arith.constant 0 : index
    %c0_15 = arith.constant 0 : index
    %25 = vector.load %arg14[%c0_14, %c0_15] : memref<112x128xbf16, #tpu.memory_space<vmem>>, vector<16x128xbf16>
    tpu.vector_store %arg14[%c0_14, %c0_15], %24 {strides = array<i32>} : memref<112x128xbf16, #tpu.memory_space<vmem>>, vector<16x128xbf16>,
    %c0_16 = arith.constant 0 : index
    %c3 = arith.constant 3 : index
    %26 = vector.load %arg13[%c0_16, %c3] : memref<16x256xbf16, #tpu.memory_space<vmem>>, vector<16x128xbf16>
    %c16 = arith.constant 16 : index
    %c0_17 = arith.constant 0 : index
    %27 = vector.load %arg14[%c16, %c0_17] : memref<112x128xbf16, #tpu.memory_space<vmem>>, vector<16x128xbf16>
    tpu.vector_store %arg14[%c16, %c0_17], %26 {strides = array<i32>} : memref<112x128xbf16, #tpu.memory_space<vmem>>, vector<16x128xbf16>,
    %c0_18 = arith.constant 0 : index
    %c6 = arith.constant 6 : index
    %28 = vector.load %arg13[%c0_18, %c6] : memref<16x256xbf16, #tpu.memory_space<vmem>>, vector<16x128xbf16>
    %c32 = arith.constant 32 : index
    %c0_19 = arith.constant 0 : index
    %29 = vector.load %arg14[%c32, %c0_19] : memref<112x128xbf16, #tpu.memory_space<vmem>>, vector<16x128xbf16>
    tpu.vector_store %arg14[%c32, %c0_19], %28 {strides = array<i32>} : memref<112x128xbf16, #tpu.memory_space<vmem>>, vector<16x128xbf16>,
    %c0_20 = arith.constant 0 : index
    %c9 = arith.constant 9 : index
    %30 = vector.load %arg13[%c0_20, %c9] : memref<16x256xbf16, #tpu.memory_space<vmem>>, vector<16x128xbf16>
    %c48 = arith.constant 48 : index
    %c0_21 = arith.constant 0 : index
    %31 = vector.load %arg14[%c48, %c0_21] : memref<112x128xbf16, #tpu.memory_space<vmem>>, vector<16x128xbf16>
    tpu.vector_store %arg14[%c48, %c0_21], %30 {strides = array<i32>} : memref<112x128xbf16, #tpu.memory_space<vmem>>, vector<16x128xbf16>,
    %c0_22 = arith.constant 0 : index
    %c12 = arith.constant 12 : index
    %32 = vector.load %arg13[%c0_22, %c12] : memref<16x256xbf16, #tpu.memory_space<vmem>>, vector<16x128xbf16>
    %c64 = arith.constant 64 : index
    %c0_23 = arith.constant 0 : index
    %33 = vector.load %arg14[%c64, %c0_23] : memref<112x128xbf16, #tpu.memory_space<vmem>>, vector<16x128xbf16>
    tpu.vector_store %arg14[%c64, %c0_23], %32 {strides = array<i32>} : memref<112x128xbf16, #tpu.memory_space<vmem>>, vector<16x128xbf16>,
    %c0_24 = arith.constant 0 : index
    %c15 = arith.constant 15 : index
    %34 = vector.load %arg13[%c0_24, %c15] : memref<16x256xbf16, #tpu.memory_space<vmem>>, vector<16x128xbf16>
    %c80 = arith.constant 80 : index
    %c0_25 = arith.constant 0 : index
    %35 = vector.load %arg14[%c80, %c0_25] : memref<112x128xbf16, #tpu.memory_space<vmem>>, vector<16x128xbf16>
    tpu.vector_store %arg14[%c80, %c0_25], %34 {strides = array<i32>} : memref<112x128xbf16, #tpu.memory_space<vmem>>, vector<16x128xbf16>,
    %c0_26 = arith.constant 0 : index
    %c18 = arith.constant 18 : index
    %36 = vector.load %arg13[%c0_26, %c18] : memref<16x256xbf16, #tpu.memory_space<vmem>>, vector<16x128xbf16>
    %c96 = arith.constant 96 : index
    %c0_27 = arith.constant 0 : index
    %37 = vector.load %arg14[%c96, %c0_27] : memref<112x128xbf16, #tpu.memory_space<vmem>>, vector<16x128xbf16>
    tpu.vector_store %arg14[%c96, %c0_27], %36 {strides = array<i32>} : memref<112x128xbf16, #tpu.memory_space<vmem>>, vector<16x128xbf16>,
    %c0_28 = arith.constant 0 : index
    %c0_29 = arith.constant 0 : index
    %38 = vector.load %arg6[%c0_28, %c0_29] : memref<16x112xbf16, #tpu.memory_space<vmem>>, vector<16x112xbf16>
    %c0_30 = arith.constant 0 : index
    %c0_31 = arith.constant 0 : index
    %39 = vector.load %arg14[%c0_30, %c0_31] : memref<112x128xbf16, #tpu.memory_space<vmem>>, vector<112x128xbf16>
    %cst = arith.constant dense<0.000000e+00> : vector<16x128xf32>
    %40 = tpu.matmul %38, %39, %cst {dimension_numbers = #tpu.dot_dimension_numbers<[1], [0], [0], [1], [0, 0, 1, 1], [], []>} : vector<16x112xbf16>, vector<112x128xbf16>, vector<16x128xf32> -> vector<16x128xf32>
    %c0_32 = arith.constant 0 : index
    %c0_33 = arith.constant 0 : index
    %41 = vector.load %arg7[%c0_32, %c0_33] : memref<16x1xf32, #tpu.memory_space<vmem>>, vector<16x1xf32>
    %42 = vector.broadcast %41 : vector<16x1xf32> to vector<16x128xf32>
    %43 = arith.addf %40, %42 : vector<16x128xf32>
    %c0_34 = arith.constant 0 : index
    %c0_35 = arith.constant 0 : index
    %44 = vector.load %arg8[%c0_34, %c0_35] : memref<16x1xf32, #tpu.memory_space<vmem>>, vector<16x1xf32>
    %c0_36 = arith.constant 0 : index
    %c0_37 = arith.constant 0 : index
    %45 = vector.load %arg9[%c0_36, %c0_37] : memref<16x1xf32, #tpu.memory_space<vmem>>, vector<16x1xf32>
    %46 = vector.broadcast %44 : vector<16x1xf32> to vector<16x128xf32>
    %47 = arith.mulf %46, %43 : vector<16x128xf32>
    %48 = math.sin %47 : vector<16x128xf32>
    %49 = arith.mulf %48, %48 : vector<16x128xf32>
    %50 = vector.broadcast %45 : vector<16x1xf32> to vector<16x128xf32>
    %51 = arith.mulf %50, %49 : vector<16x128xf32>
    %52 = arith.addf %43, %51 : vector<16x128xf32>
    %53 = arith.truncf %52 : vector<16x128xf32> to vector<16x128xbf16>
    %c0_38 = arith.constant 0 : index
    %c0_39 = arith.constant 0 : index
    %54 = vector.load %arg10[%c0_38, %c0_39] : memref<16x16xbf16, #tpu.memory_space<vmem>>, vector<16x16xbf16>
    %cst_40 = arith.constant dense<0.000000e+00> : vector<16x128xf32>
    %55 = tpu.matmul %54, %53, %cst_40 {dimension_numbers = #tpu.dot_dimension_numbers<[1], [0], [0], [1], [0, 0, 1, 1], [], []>} : vector<16x16xbf16>, vector<16x128xbf16>, vector<16x128xf32> -> vector<16x128xf32>
    %c0_41 = arith.constant 0 : index
    %c0_42 = arith.constant 0 : index
    %56 = vector.load %arg11[%c0_41, %c0_42] : memref<16x1xf32, #tpu.memory_space<vmem>>, vector<16x1xf32>
    %57 = vector.broadcast %56 : vector<16x1xf32> to vector<16x128xf32>
    %58 = arith.addf %55, %57 : vector<16x128xf32>
    %59 = vector.extract_strided_slice %58 {offsets = [0, 0], sizes = [16, 119], strides = [1, 1]} : vector<16x128xf32> to vector<16x119xf32>
    %60 = vector.extract_strided_slice %1 {offsets = [0, 9], sizes = [16, 119], strides = [1, 1]} : vector<16x128xf32> to vector<16x119xf32>
    %61 = arith.addf %59, %60 : vector<16x119xf32>
    %c0_43 = arith.constant 0 : index
    %c0_44 = arith.constant 0 : index
    %c0_45 = arith.constant 0 : index
    %62 = vector.load %arg12[%c0_43, %c0_44, %c0_45] : memref<1x16x128xf32, #tpu.memory_space<vmem>>, vector<1x16x119xf32>
    %63 = vector.shape_cast %62 : vector<1x16x119xf32> to vector<16x119xf32>
    %64 = vector.shape_cast %61 : vector<16x119xf32> to vector<1x16x119xf32>
    tpu.vector_store %arg12[%c0_43, %c0_44, %c0_45], %64 {strides = array<i32>} : memref<1x16x128xf32, #tpu.memory_space<vmem>>, vector<1x16x119xf32>,
    %65 = vector.extract_strided_slice %58 {offsets = [0, 119], sizes = [16, 9], strides = [1, 1]} : vector<16x128xf32> to vector<16x9xf32>
    %66 = vector.extract_strided_slice %3 {offsets = [0, 0], sizes = [16, 9], strides = [1, 1]} : vector<16x128xf32> to vector<16x9xf32>
    %67 = arith.addf %65, %66 : vector<16x9xf32>
    %c0_46 = arith.constant 0 : index
    %c0_47 = arith.constant 0 : index
    %c119 = arith.constant 119 : index
    %68 = vector.load %arg12[%c0_46, %c0_47, %c119] : memref<1x16x128xf32, #tpu.memory_space<vmem>>, vector<1x16x9xf32>
    %69 = vector.shape_cast %68 : vector<1x16x9xf32> to vector<16x9xf32>
    %70 = vector.shape_cast %67 : vector<16x9xf32> to vector<1x16x9xf32>
    tpu.vector_store %arg12[%c0_46, %c0_47, %c119], %70 {strides = array<i32>} : memref<1x16x128xf32, #tpu.memory_space<vmem>>, vector<1x16x9xf32>,
    return
  }
  func.func @transform_0(%arg0: i32, %arg1: i32) -> (i32, i32, i32) {
    %c0_i32 = arith.constant 0 : i32
    %c0_i32_0 = arith.constant 0 : i32
    return %arg0, %c0_i32, %arg1 : i32, i32, i32
  }
  func.func @transform_1(%arg0: i32, %arg1: i32) -> (i32, i32, i32) {
    %c1_i32 = arith.constant 1 : i32
    %0 = arith.addi %arg1, %c1_i32 : i32
    %c1_i32_0 = arith.constant 1 : i32
    %1 = arith.muli %0, %c1_i32_0 : i32
    %c0_i32 = arith.constant 0 : i32
    %c0_i32_1 = arith.constant 0 : i32
    return %arg0, %c0_i32, %1 : i32, i32, i32
  }
  func.func @transform_2(%arg0: i32, %arg1: i32) -> (i32, i32) {
    %c0_i32 = arith.constant 0 : i32
    %c0_i32_0 = arith.constant 0 : i32
    %c0_i32_1 = arith.constant 0 : i32
    return %c0_i32, %c0_i32_0 : i32, i32
  }
  func.func @transform_3(%arg0: i32, %arg1: i32) -> (i32, i32) {
    %c0_i32 = arith.constant 0 : i32
    %c0_i32_0 = arith.constant 0 : i32
    %c0_i32_1 = arith.constant 0 : i32
    return %c0_i32, %c0_i32_0 : i32, i32
  }
  func.func @transform_4(%arg0: i32, %arg1: i32) -> (i32, i32) {
    %c0_i32 = arith.constant 0 : i32
    %c0_i32_0 = arith.constant 0 : i32
    %c0_i32_1 = arith.constant 0 : i32
    return %c0_i32, %c0_i32_0 : i32, i32
  }
  func.func @transform_5(%arg0: i32, %arg1: i32) -> (i32, i32) {
    %c0_i32 = arith.constant 0 : i32
    %c0_i32_0 = arith.constant 0 : i32
    %c0_i32_1 = arith.constant 0 : i32
    return %c0_i32, %c0_i32_0 : i32, i32
  }
  func.func @transform_6(%arg0: i32, %arg1: i32) -> (i32, i32) {
    %c0_i32 = arith.constant 0 : i32
    %c0_i32_0 = arith.constant 0 : i32
    %c0_i32_1 = arith.constant 0 : i32
    return %c0_i32, %c0_i32_0 : i32, i32
  }
  func.func @transform_7(%arg0: i32, %arg1: i32) -> (i32, i32) {
    %c0_i32 = arith.constant 0 : i32
    %c0_i32_0 = arith.constant 0 : i32
    %c0_i32_1 = arith.constant 0 : i32
    return %c0_i32, %c0_i32_0 : i32, i32
  }
  func.func @transform_8(%arg0: i32, %arg1: i32) -> (i32, i32) {
    %c0_i32 = arith.constant 0 : i32
    %c0_i32_0 = arith.constant 0 : i32
    %c0_i32_1 = arith.constant 0 : i32
    return %c0_i32, %c0_i32_0 : i32, i32
  }
  func.func @transform_9(%arg0: i32, %arg1: i32) -> (i32, i32) {
    %c0_i32 = arith.constant 0 : i32
    %c0_i32_0 = arith.constant 0 : i32
    %c0_i32_1 = arith.constant 0 : i32
    return %c0_i32, %c0_i32_0 : i32, i32
  }
  func.func @transform_10(%arg0: i32, %arg1: i32) -> (i32, i32, i32) {
    %c0_i32 = arith.constant 0 : i32
    %c0_i32_0 = arith.constant 0 : i32
    return %arg0, %c0_i32, %arg1 : i32, i32, i32
  }
}

</mosaic_0001>

<bundles_post_ra>
// kernel: tpu_custom_call.1
= control target key start
LH: loop header
LB: loop body
LE: loop exit
PB: predicated region body
PF: predicated region fallthrough
CT: control target
= control target key end

     0   :  { %s2560_s0 = inlined_call_operand.vmem [shape: f32[2,16,256], index: 0, kind: input, shape index: {}]   ;;  %s2561_s1 = inlined_call_operand.hbm [shape: f32[2,16,256], index: 1, kind: input, shape index: {}]   ;;  %s2562_s2 = inlined_call_operand.vmem [shape: f32[16,1], index: 2, kind: input, shape index: {}]   ;;  %s2563_s3 = inlined_call_operand.vmem [shape: f32[16,1], index: 3, kind: input, shape index: {}]   ;;  %s2564_s4 = inlined_call_operand.vmem [shape: bf16[16,112], index: 4, kind: input, shape index: {}]   ;;  %s2565_s5 = inlined_call_operand.vmem [shape: f32[16,1], index: 5, kind: input, shape index: {}]   ;;  %s2566_s6 = inlined_call_operand.vmem [shape: f32[16,1], index: 6, kind: input, shape index: {}]   ;;  %s2567_s7 = inlined_call_operand.vmem [shape: f32[16,1], index: 7, kind: input, shape index: {}]   ;;  %s2568_s8 = inlined_call_operand.vmem [shape: bf16[16,16], index: 8, kind: input, shape index: {}]   ;;  %s2569_s9 = inlined_call_operand.vmem [shape: f32[16,1], index: 9, kind: input, shape index: {}]   ;;  %s2570_s10 = inlined_call_operand.hbm [shape: f32[2,16,128], index: 10, kind: output, shape index: {}]  }
   0x1   :  { %2577 = sst [smem:[#allocation15_spill]] %s2570_s10 }
   0x2   :  { %15 = vsyncpa [#allocation6], 0 }
   0x3   :  { %17 = vsyncpa [#allocation6 + $0x1], 0 }
   0x4   :  { %18 = vsyncpa [#allocation7], 0 }
   0x5   :  { %20 = vsyncpa [#allocation7 + $0x1], 0  ;;  %s1926_s13 = smov 0   ;;  %s1928_s14 = smov 0  }
   0x6   :  { %s1930_s15 = smov 0   ;;  %s1932_s16 = smov 0  }
   0x7   :  { %s1934_s17 = smov 0   ;;  %s1936_s18 = smov 0  }
   0x8 LB: > { %2578 = sst [smem:[#allocation11_spill]] %s1827_s13  ;;  %s1523_s19 = sadd.s32 4294967295, %s1847_s18   ;;  %s1847_s18 = sphi %s1936_s18, %s26_s18   ;;  %s1843_s17 = sphi %s1934_s17, %s2608_s17   ;;  %s1839_s16 = sphi %s1932_s16, %s2607_s16   ;;  %s1835_s15 = sphi %s1930_s15, %s2606_s15   ;;  %s1831_s14 = sphi %s1928_s14, %s2605_s14   ;;  %s1827_s13 = sphi %s1926_s13, %s2604_s13  }
   0x9   : > { %s1524_s20 = sadd.s32 4294967294, %s1847_s18   ;;  %s38_s21 = sadd.s32 1, %s1843_s17 }
   0xa   : > { %s47_s22 = sadd.s32 1, %s1835_s15  ;;  %p40_p0 = scmp.ge.s32.totalorder %s38_s21, 2 }
   0xb   : > { %p54_p1 = scmp.ne.s32.totalorder %s1835_s15, %s1831_s14  ;;  %p55_p2 = scmp.eq.s32.totalorder %s1847_s18, 0 }
   0xc   : > { %p90_p3 = scmp.ne.s32.totalorder %s1831_s14, %s1827_s13  ;;  %s2610_s21 = smov (%p40_p0, %s38_s21), 0 }
   0xd   : > { %2579 = sst [smem:[#allocation12_spill]] %s2610_s21  ;;  %p1967_p4 = por %p55_p2, %p54_p1 }
   0xe   : > { %p91_p5 = scmp.eq.s32.totalorder %s1523_s19, 0  ;;  %s42_s24 = ssub.s32 %s1843_s17, %s2610_s21 }
   0xf   : > { %p284_p6 = scmp.eq.s32.totalorder %s1523_s19, 1  ;;  %p45_p7 = scmp.eq.s32.totalorder %s42_s24, 0 }
  0x10   : > { %p1973_p8 = por %p91_p5, %p90_p3  ;;  %p290_p10 = scmp.eq.s32.totalorder %s1524_s20, 1 }
  0x11   : > { %p1977_p9 = por %p284_p6, %p54_p1  ;;  %p2575_p12 = scmp.ge.s32.totalorder %s1847_s18, 2 }
  0x12   : > { %s1982_s27 = scalar_select %p45_p7, %s1835_s15, %s47_s22  }
  0x13   : > { %s2582_s26 = scalar_select %p1977_p9, 1, 0 }
  0x14   : > { %2583 = sst [smem:[#allocation13_spill]] %s1982_s27  ;;  %p1984_p11 = por %p290_p10, %p90_p3 }
  0x15   : > { %330 = sbr.rel (%p2575_p12) target bundleno = 63 (0x3f), region = 48 }
  0x16   : > { %s2584_s28 = scalar_select %p1984_p11, 1, 0 }
  0x18   : > { %2585 = sst [smem:[#allocation14_spill]] %s2584_s28 }
  0x1c   : > { %333 = sbr.rel (!%p1967_p4) target bundleno = 35 (0x23), region = 52  ;;  %s335_s29 = sand.u32 (%p1967_p4), 1, %s1835_s15  }
  0x1d   : > { %s1570_s30 = sshll.u32 (%p1967_p4), %s1843_s17, 5  ;;  %s1527_s11 = sshll.u32 (%p1967_p4), %s335_s29, 4 }
  0x1e   : > { %s341_s20 = scalar_lea.vmem (%p1967_p4), %s2560_s0, %s1570_s30  ;;  %s337_s22 = scalar_lea.vmem (%p1967_p4), [#allocation4], %s1527_s11 }
  0x1f   : > { %v371_v0 = vld [vmem:[%s341_s20] sm:$0xff] (%p1967_p4)  ;;  %v373_v1 = vld [vmem:[%s341_s20 + $0x10] sm:$0xff] (%p1967_p4) }
  0x20   : > { %372 = vst [vmem:[%s337_s22] sm:$0xff] (%p1967_p4), %v371_v0  ;;  %374 = vst [vmem:[%s337_s22 + $0x8] sm:$0xff] (%p1967_p4), %v373_v1 }
  0x23 PF: > { %s381_s24 = sand.u32 1, %s1835_s15   ;;  %s1571_s21 = sshll.u32 %s1843_s17, 9 }
  0x24   : > { %s1530_s27 = sshll.u32 %s381_s24, 4  ;;  %s1456_s29 = scalar_lea.hbm %s2561_s1, %s1571_s21 }
  0x25   : > { %s2003_s10 = scalar_lea.hbm %s1456_s29, 128  ;;  %s385_s30 = scalar_lea.vmem [#allocation5], %s1530_s27 }
  0x26   : > { %s394_s11 = sshll.u32 %s385_s30, 4  ;;  %s2007_s12 = scalar_lea.sflag [#allocation6], %s381_s24  ;;  %s2005_s11 = int_to_ptr.vmem [resolvable:$true] %s394_s11 }
  0x27   : > { %s1764_s19 = scalar_lea.hbm %s1456_s29, 384  ;;  %s1740_s13 = scalar_lea.hbm %s2561_s1, 1024 }
  0x28   : > { %p1737_p13 = scmp.ne.s32.totalorder %s2003_s10, %s1764_s19  ;;  %p1741_p2 = scmp.lt.u32.totalorder %s2003_s10, %s2561_s1 }
  0x29   : > { %p1742_p3 = scmp.lt.u32.totalorder %s1740_s13, %s1764_s19  ;;  %p1744_p6 = scmp.lt.u32.totalorder %s1764_s19, %s2003_s10 }
  0x2a   : > { %p1738_p0 = pnand %p1737_p13, %p1967_p4 }
  0x2b   : > { %p1743_p5 = por %p1742_p3, %p1741_p2 }
  0x2c   : > { %p1739_p1 = pneg %p1738_p0 }
  0x2d   : > { %p1745_p7 = por %p1744_p6, %p1743_p5 }
  0x2f   : > { %p1746_p10 = pnand %p1745_p7, %p1739_p1 }
  0x31   : > { %1749 = shalt.err (!%p1746_p10)
}
  0x32   : > { %s1750_s27 = scalar_lea.vmem %s2005_s11, 256  ;;  %s1849_s24 = smov [#allocation5]  }
  0x33   : > { %p1751_p13 = scmp.ne.s32.totalorder %s2005_s11, %s1750_s27  ;;  %s1754_s29 = sshll.u32 %s1849_s24, 4  ;;  %s1755_s29 = int_to_ptr.vmem [resolvable:$false] %s1754_s29 }
  0x34   : > { %s1756_s30 = scalar_lea.vmem %s1755_s29, 512  ;;  %p1757_p11 = scmp.lt.s32.totalorder %s2005_s11, %s1755_s29 }
  0x35   : > { %p1752_p0 = pnand %p1751_p13, %p1967_p4  ;;  %p1758_p9 = scmp.lt.s32.totalorder %s1756_s30, %s1750_s27 }
  0x37   : > { %p1753_p12 = pneg %p1752_p0  ;;  %p1759_p2 = por %p1758_p9, %p1757_p11 }
  0x39   : > { %p1760_p3 = pnand %p1759_p2, %p1753_p12 }
  0x3b   : > { %1763 = shalt.err (!%p1760_p3)
}
  0x3c   : > { %s1850_s19 = smov 256   ;;  %s1851_s20 = smov 128  }
  0x3d   : > { %s1852_s22 = smov 8  }
  0x3e   : > { %1631 = dma.hbm_to_vmem [thread:$0]  (%p1967_p4), %s2003_s10, 256, %s2005_s11, %s2007_s12, %s1850_s19, %s1851_s20, %s1852_s22  }
  0x3f PF: > { %p1533_p1 = scmp.ge.s32.totalorder %s1847_s18, 1  ;;  %p402_p5 = scmp.lt.s32.totalorder %s1847_s18, 3 }
  0x41   : > { %p403_p6 = pnand %p1533_p1, %p402_p5 }
  0x42   : > { %s2033_s13 = sand.u32 (!%p403_p6), 1, %s1831_s14  }
  0x43   : > { %406 = sbr.rel (%p403_p6) target bundleno = 1030 (0x406), region = 94  ;;  %s2036_s21 = sshll.u32 (!%p403_p6), %s2033_s13, 4 }
  0x44   : > { %s411_s28 = scalar_lea.vmem (!%p403_p6), [#allocation4], %s2036_s21  ;;  %s416_s23 = scalar_lea.sflag (!%p403_p6), [#allocation6], %s2033_s13 }
  0x45   : > { %s419_s10 = scalar_lea.vmem (!%p403_p6), [#allocation5], %s2036_s21 }
  0x4a   : > { %1818 = dma.done.wait (%p1973_p8), %s416_s23, 256  }
  0x4b   : > { %1820 = vsyncadd (%p1973_p8), %s416_s23, 4294967040  ;;  %v1853_v2 = vmov 0   ;;  %v466_v3 = vld [vmem:[%s2562_s2] sm:$0xff]  ;;  %v467_v5 = vld [vmem:[%s2562_s2 + $0x8] sm:$0xff]  ;;  %v1854_v47 = vmov 683565275  }
  0x4c   : > { %1708 = vset.pattern.permute.xlu0 %v1853_v2  ;;  %1709 = vset.pattern.permute.xlu1 %v1853_v2  ;;  %v468_v4 = vld [vmem:[%s2563_s3] sm:$0xff]  ;;  %v469_v6 = vld [vmem:[%s2563_s3 + $0x8] sm:$0xff]  ;;  %v1855_v49 = vmov 2475754826   ;;  %v1856_v52 = vmov 2131351028  }
  0x4d   : > { %472 = vperm.xlu0 %1708, %v466_v3   ;;  %694 = vperm.xlu1 %1709, %v468_v4   ;;  %v2057_v7 = vld [vmem:[%s411_s28] sm:$0xff]  ;;  %v2069_v12 = vld [vmem:[%s411_s28 + $0x8] sm:$0xff]  ;;  %v1857_v54 = vmov 2102212464   ;;  %v1858_v56 = vmov 920167782  }
  0x4e   : > { %v2061_v8 = vld [vmem:[%s419_s10] sm:$0xff]  ;;  %v2084_v24 = vld [vmem:[%s419_s10 + $0x8] sm:$0xff]  ;;  %v1859_v63 = vmov 1326507024   ;;  %s1861_s20 = smov 125   ;;  %s1862_s22 = smov 122  }
  0x4f   : > { %s1863_s28 = smov 119   ;;  %s1864_s23 = smov 116  }
  0x50   : > { %s1865_s10 = smov 113   ;;  %s1866_s11 = smov 110  }
  0x51   : > { %477 = vperm.xlu0 %1708, %v467_v5   ;;  %699 = vperm.xlu1 %1709, %v469_v6   ;;  %p2597_p8 = scmp.ne.s32.totalorder %s2582_s26, 0 }
  0xcc   : > { %v473_v9 = vpop.permute.xlu0 %472 }
  0xcd   : > { %v2064_v10 = vmul.f32 %v473_v9, %v2057_v7  ;;  %v2067_v11 = vmul.f32 %v473_v9, %v2061_v8 }
  0xcf   : > { %v482_v13 = vand.u32 2147483647, %v2064_v10  ;;  %v485_v14 = vand.u32 2139095040, %v2064_v10  ;;  %v710_v15 = vand.u32 2147483647, %v2067_v11  ;;  %v713_v16 = vand.u32 2139095040, %v2067_v11 }
  0xd0   : > { %v478_v17 = vpop.permute.xlu0 %477 }
  0xd1   : > { %v486_v18 = vshrl.u32 %v485_v14, 23  ;;  %v489_v19 = vand.u32 8388607, %v482_v13  ;;  %v717_v20 = vand.u32 8388607, %v710_v15  ;;  %v2080_v21 = vmul.f32 %v478_v17, %v2069_v12 }
  0xd2   : > { %v714_v22 = vshrl.u32 %v713_v16, 23  ;;  %v2093_v34 = vmul.f32 %v478_v17, %v2084_v24 }
  0xd3   : > { %v1537_v23 = vadd.s32 4294967169, %v486_v18  ;;  %v586_v25 = vand.u32 2147483647, %v2080_v21  ;;  %v490_v26 = vor.u32 8388608, %v489_v19  ;;  %v589_v28 = vand.u32 2139095040, %v2080_v21 }
  0xd4   : > { %v1545_v27 = vadd.s32 4294967169, %v714_v22  ;;  %v718_v30 = vor.u32 8388608, %v717_v20  ;;  %v817_v45 = vand.u32 2139095040, %v2093_v34 }
  0xd5   : > { %v492_v29 = vadd.s32 1, %v1537_v23  ;;  %v590_v32 = vshrl.u32 %v589_v28, 23  ;;  %v2090_v33 = vand.u32 8388607, %v586_v25  ;;  %v2095_v36 = vshll.u32 %v490_v26, 8 }
  0xd6   : > { %v720_v31 = vadd.s32 1, %v1545_v27  ;;  %v2097_v41 = vshll.u32 %v718_v30, 8 }
  0xd7   : > { %vm493_vm0 = vcmp.gt.s32.totalorder %v492_v29, 0  ;;  %v1541_v37 = vadd.s32 4294967169, %v590_v32  ;;  %v594_v44 = vor.u32 8388608, %v2090_v33 }
  0xd8   : > { %v494_v35 = vsel %vm493_vm0, %v492_v29, 0  ;;  %vm721_vm1 = vcmp.gt.s32.totalorder %v720_v31, 0 }
  0xd9   : > { %v495_v38 = vshrl.u32 %v494_v35, 5  ;;  %v496_v39 = vand.u32 31, %v494_v35  ;;  %v722_v40 = vsel %vm721_vm1, %v720_v31, 0  ;;  %v2105_v51 = vadd.s32 1, %v1541_v37 }
  0xda   : > { %v2099_v42 = vshrl.u32 %v722_v40, 5  ;;  %v724_v43 = vand.u32 31, %v722_v40 }
  0xdb   : > { %v497_v46 = vsub.s32 32, %v496_v39  ;;  %v499_v48 = vshll.u32 %v1854_v47, %v496_v39  ;;  %v502_v50 = vshll.u32 %v1855_v49, %v496_v39  ;;  %v505_v53 = vshll.u32 %v1856_v52, %v496_v39 }
  0xdc   : > { %v508_v55 = vshll.u32 %v1857_v54, %v496_v39  ;;  %v511_v57 = vshll.u32 %v1858_v56, %v496_v39  ;;  %vm514_vm2 = vcmp.lt.s32.totalorder %v495_v38, 1  ;;  %vm515_vm3 = vcmp.lt.s32.totalorder %v495_v38, 2 }
  0xdd   : > { %v500_v58 = vshrl.u32 %v1855_v49, %v497_v46  ;;  %v503_v59 = vshrl.u32 %v1856_v52, %v497_v46  ;;  %v506_v60 = vshrl.u32 %v1857_v54, %v497_v46  ;;  %v498_v61 = vshrl.u32 %v1854_v47, %v497_v46 }
  0xde   : > { %v509_v62 = vshrl.u32 %v1858_v56, %v497_v46  ;;  %v512_v0 = vshrl.u32 %v1859_v63, %v497_v46  ;;  %vm516_vm4 = vcmp.lt.s32.totalorder %v495_v38, 3  ;;  %v725_v4 = vsub.s32 32, %v724_v43 }
  0xdf   : > { %v501_v1 = vor.u32 %v500_v58, %v499_v48  ;;  %v504_v2 = vor.u32 %v503_v59, %v502_v50  ;;  %v507_v3 = vor.u32 %v506_v60, %v505_v53  ;;  %vm517_vm5 = vcmp.lt.s32.totalorder %v495_v38, 4 }
  0xe0   : > { %v510_v5 = vor.u32 %v509_v62, %v508_v55  ;;  %v513_v6 = vor.u32 %v512_v0, %v511_v57  ;;  %v727_v9 = vshll.u32 %v1854_v47, %v724_v43  ;;  %v730_v23 = vshll.u32 %v1855_v49, %v724_v43 }
  0xe1   : > { %v518_v14 = vsel %vm514_vm2, %v498_v61, %v501_v1  ;;  %v519_v16 = vsel %vm517_vm5, %v507_v3, 2102212464  ;;  %v522_v17 = vsel %vm514_vm2, %v501_v1, %v504_v2  ;;  %v526_v18 = vsel %vm514_vm2, %v504_v2, %v507_v3 }
  0xe2   : > { %v520_v19 = vsel %vm516_vm4, %v504_v2, %v519_v16  ;;  %v523_v20 = vsel %vm517_vm5, %v510_v5, 920167782  ;;  %v527_v22 = vsel %vm517_vm5, %v513_v6, 1326507024  ;;  %v726_v28 = vshrl.u32 %v1854_v47, %v725_v4 }
  0xe3   : > { %v524_v26 = vsel %vm516_vm4, %v507_v3, %v523_v20  ;;  %v528_v27 = vsel %vm516_vm4, %v510_v5, %v527_v22  ;;  %v728_v29 = vshrl.u32 %v1855_v49, %v725_v4  ;;  %v521_v30 = vsel %vm515_vm3, %v518_v14, %v520_v19 }
  0xe4   : > { %v525_v31 = vsel %vm515_vm3, %v522_v17, %v524_v26  ;;  %v529_v32 = vsel %vm515_vm3, %v526_v18, %v528_v27  ;;  %v731_v35 = vshrl.u32 %v1856_v52, %v725_v4  ;;  %v733_v53 = vshll.u32 %v1856_v52, %v724_v43 }
  0xe5   : > { %v2131_v37 = vmul.u32.u64.low %v2095_v36, %v529_v32  ;;  %v2132_v39 = vmul.u32.u64.high %v2095_v36, %v529_v32, %v2131_v37  ;;  %v2135_v40 = vmul.u32.u64.low %v2095_v36, %v525_v31  ;;  %v2136_v46 = vmul.u32.u64.high %v2095_v36, %v525_v31, %v2135_v40 }
  0xe6   : > { %v729_v48 = vor.u32 %v728_v29, %v727_v9  ;;  %v732_v50 = vor.u32 %v731_v35, %v730_v23  ;;  %v734_v55 = vshrl.u32 %v1857_v54, %v725_v4  ;;  %v537_v57 = vmul.u32 %v2095_v36, %v521_v30 }
  0xe7   : > { %v736_v38 = vshll.u32 %v1857_v54, %v724_v43  ;;  %v737_v58 = vshrl.u32 %v1858_v56, %v725_v4  ;;  %v740_v59 = vshrl.u32 %v1859_v63, %v725_v4  ;;  %v739_v61 = vshll.u32 %v1858_v56, %v724_v43 }
  0xe8   : > { %v735_v60 = vor.u32 %v734_v55, %v733_v53  ;;  %vm742_vm6 = vcmp.lt.s32.totalorder %v2099_v42, 1  ;;  %vm743_vm7 = vcmp.lt.s32.totalorder %v2099_v42, 2  ;;  %vm539_vm8 = vc.u32 %v2132_v39, %v2135_v40 }
  0xe9   : > { %v540_v62 = vadd.s32 1, %v2136_v46  ;;  %v738_v0 = vor.u32 %v737_v58, %v736_v38  ;;  %vm744_vm9 = vcmp.lt.s32.totalorder %v2099_v42, 3  ;;  %v741_v36 = vor.u32 %v740_v59, %v739_v61 }
  0xea   : > { %vm745_vm10 = vcmp.lt.s32.totalorder %v2099_v42, 4  ;;  %v746_v1 = vsel %vm742_vm6, %v726_v28, %v729_v48  ;;  %v750_v2 = vsel %vm742_vm6, %v729_v48, %v732_v50  ;;  %v754_v5 = vsel %vm742_vm6, %v732_v50, %v735_v60 }
  0xeb   : > { %v541_v3 = vsel %vm539_vm8, %v540_v62, %v2136_v46  ;;  %v747_v4 = vsel %vm745_vm10, %v735_v60, 2102212464  ;;  %v751_v43 = vsel %vm745_vm10, %v738_v0, 920167782  ;;  %v755_v16 = vsel %vm745_vm10, %v741_v36, 1326507024 }
  0xec   : > { %v542_v6 = vadd.s32 %v541_v3, %v537_v57  ;;  %v748_v9 = vsel %vm744_vm9, %v732_v50, %v747_v4  ;;  %v752_v14 = vsel %vm744_vm9, %v735_v60, %v751_v43  ;;  %v756_v18 = vsel %vm744_vm9, %v738_v0, %v755_v16 }
  0xed   : > { %v753_v17 = vsel %vm743_vm7, %v750_v2, %v752_v14  ;;  %vm597_vm11 = vcmp.gt.s32.totalorder %v2105_v51, 0  ;;  %v818_v19 = vshrl.u32 %v817_v45, 23  ;;  %v757_v22 = vsel %vm743_vm7, %v754_v5, %v756_v18 }
  0xee   : > { %v543_v20 = vadd.s32 536870912, %v542_v6  ;;  %v2160_v23 = vmul.u32.u64.low %v2097_v41, %v753_v17  ;;  %v2161_v26 = vmul.u32.u64.high %v2097_v41, %v753_v17, %v2160_v23  ;;  %v749_v27 = vsel %vm743_vm7, %v746_v1, %v748_v9 }
  0xef   : > { %v2167_v28 = vmul.u32.u64.low %v2097_v41, %v757_v22  ;;  %v2168_v29 = vmul.u32.u64.high %v2097_v41, %v757_v22, %v2167_v28  ;;  %v598_v30 = vsel %vm597_vm11, %v2105_v51, 0  ;;  %v2174_v32 = vadd.s32 %v2135_v40, %v2132_v39 }
  0xf0   : > { %v2171_v31 = vshrl.u32 %v543_v20, 30  ;;  %v600_v45 = vand.u32 31, %v598_v30  ;;  %v2178_v35 = vshll.u32 %v594_v44, 8  ;;  %v814_v37 = vand.u32 2147483647, %v2093_v34 }
  0xf1   : > { %v1549_v42 = vadd.s32 4294967169, %v818_v19  ;;  %v765_v48 = vmul.u32 %v2097_v41, %v749_v27  ;;  %v768_v50 = vadd.s32 1, %v2161_v26  ;;  %vm767_vm12 = vc.u32 %v2168_v29, %v2160_v23 }
  0xf2   : > { %v545_v46 = vshll.u32 %v2171_v31, 30  ;;  %v601_v51 = vsub.s32 32, %v600_v45  ;;  %v599_v53 = vshrl.u32 %v598_v30, 5  ;;  %v603_v39 = vshll.u32 %v1854_v47, %v600_v45 }
  0xf3   : > { %v606_v33 = vshll.u32 %v1855_v49, %v600_v45  ;;  %v769_v40 = vsel %vm767_vm12, %v768_v50, %v2161_v26  ;;  %v609_v57 = vshll.u32 %v1856_v52, %v600_v45  ;;  %v612_v59 = vshll.u32 %v1857_v54, %v600_v45 }
  0xf4   : > { %v2188_v44 = vsub.s32 %v542_v6, %v545_v46  ;;  %v604_v55 = vshrl.u32 %v1855_v49, %v601_v51  ;;  %v770_v41 = vadd.s32 %v769_v40, %v765_v48  ;;  %v607_v38 = vshrl.u32 %v1856_v52, %v601_v51 }
  0xf5   : > { %v610_v58 = vshrl.u32 %v1857_v54, %v601_v51  ;;  %v613_v62 = vshrl.u32 %v1858_v56, %v601_v51  ;;  %v615_v0 = vshll.u32 %v1858_v56, %v600_v45  ;;  %v616_v3 = vshrl.u32 %v1859_v63, %v601_v51 }
  0xf6   : > { %v548_v60 = vsub.s32 0, %v2188_v44  ;;  %v605_v61 = vor.u32 %v604_v55, %v603_v39  ;;  %v771_v36 = vadd.s32 536870912, %v770_v41  ;;  %v608_v1 = vor.u32 %v607_v38, %v606_v33 }
  0xf7   : > { %v611_v2 = vor.u32 %v610_v58, %v609_v57  ;;  %v602_v43 = vshrl.u32 %v1854_v47, %v601_v51  ;;  %v614_v5 = vor.u32 %v613_v62, %v612_v59  ;;  %v824_v6 = vadd.s32 1, %v1549_v42 }
  0xf8   : > { %v1538_v4 = vmin.u32 %v548_v60, %v2188_v44  ;;  %v2202_v9 = vshrl.u32 %v771_v36, 30  ;;  %v617_v14 = vor.u32 %v616_v3, %v615_v0  ;;  %vm618_vm13 = vcmp.lt.s32.totalorder %v599_v53, 1 }
  0xf9   : > { %vm621_vm14 = vcmp.lt.s32.totalorder %v599_v53, 4  ;;  %vm619_vm15 = vcmp.lt.s32.totalorder %v599_v53, 2  ;;  %v626_v18 = vsel %vm618_vm13, %v605_v61, %v608_v1  ;;  %vm620_vm0 = vcmp.lt.s32.totalorder %v599_v53, 3 }
  0xfa   : > { %v550_v16 = vclz %v1538_v4  ;;  %v623_v17 = vsel %vm621_vm14, %v611_v2, 2102212464  ;;  %v773_v19 = vshll.u32 %v2202_v9, 30  ;;  %v627_v20 = vsel %vm621_vm14, %v614_v5, 920167782 }
  0xfb   : > { %v630_v22 = vsel %vm618_vm13, %v608_v1, %v611_v2  ;;  %v622_v27 = vsel %vm618_vm13, %v602_v43, %v605_v61  ;;  %v628_v28 = vsel %vm620_vm0, %v611_v2, %v627_v20  ;;  %v631_v30 = vsel %vm621_vm14, %v617_v14, 1326507024 }
  0xfc   : > { %v1539_v26 = vadd.s32 4294967294, %v550_v16  ;;  %v2205_v45 = vsub.s32 %v770_v41, %v773_v19  ;;  %v624_v42 = vsel %vm620_vm0, %v608_v1, %v623_v17  ;;  %v629_v46 = vsel %vm619_vm15, %v626_v18, %v628_v28 }
  0xfd   : > { %v632_v48 = vsel %vm620_vm0, %v614_v5, %v631_v30  ;;  %v2210_v51 = vmul.u32.u64.low %v2178_v35, %v629_v46  ;;  %v2211_v39 = vmul.u32.u64.high %v2178_v35, %v629_v46, %v2210_v51  ;;  %v625_v58 = vsel %vm619_vm15, %v622_v27, %v624_v42 }
  0xfe   : > { %vm1540_vm1 = vcmp.lt.s32.totalorder %v1539_v26, 0  ;;  %v633_v50 = vsel %vm619_vm15, %v630_v22, %v632_v48  ;;  %v776_v40 = vsub.s32 0, %v2205_v45  ;;  %vm825_vm2 = vcmp.gt.s32.totalorder %v824_v6, 0 }
  0xff   : > { %v553_v33 = vsel %vm1540_vm1, 0, %v1539_v26  ;;  %v2216_v55 = vmul.u32.u64.low %v2178_v35, %v633_v50  ;;  %v2217_v57 = vmul.u32.u64.high %v2178_v35, %v633_v50, %v2216_v55  ;;  %v826_v60 = vsel %vm825_vm2, %v824_v6, 0 }
 0x100   : > { %v554_v41 = vsub.s32 32, %v553_v33  ;;  %v558_v38 = vsub.s32 4294967266, %v553_v33  ;;  %v1546_v59 = vmin.u32 %v776_v40, %v2205_v45  ;;  %v644_v0 = vadd.s32 1, %v2211_v39 }
 0x101   : > { %v641_v1 = vmul.u32 %v2178_v35, %v625_v58  ;;  %vm643_vm3 = vc.u32 %v2217_v57, %v2210_v51  ;;  %v828_v2 = vand.u32 31, %v826_v60  ;;  %v555_v3 = vshll.u32 %v2188_v44, %v553_v33 }
 0x102   : > { %v556_v61 = vshrl.u32 %v2174_v32, %v554_v41  ;;  %v559_v62 = vadd.s32 127, %v558_v38  ;;  %v778_v36 = vclz %v1546_v59  ;;  %v645_v4 = vsel %vm643_vm3, %v644_v0, %v2211_v39 }
 0x103   : > { %v821_v43 = vand.u32 8388607, %v814_v37  ;;  %v646_v32 = vadd.s32 %v645_v4, %v641_v1  ;;  %v829_v6 = vsub.s32 32, %v828_v2  ;;  %v831_v22 = vshll.u32 %v1854_v47, %v828_v2 }
 0x104   : > { %v560_v53 = vshll.u32 %v559_v62, 23  ;;  %v1547_v5 = vadd.s32 4294967294, %v778_v36  ;;  %v557_v14 = vor.u32 %v556_v61, %v555_v3  ;;  %v834_v26 = vshll.u32 %v1855_v49, %v828_v2 }
 0x105   : > { %v647_v17 = vadd.s32 536870912, %v646_v32  ;;  %v832_v35 = vshrl.u32 %v1855_v49, %v829_v6  ;;  %v822_v19 = vor.u32 8388608, %v821_v43  ;;  %v835_v44 = vshrl.u32 %v1856_v52, %v829_v6 }
 0x106   : > { %v561_v16 = vor.u32 4788187, %v560_v53  ;;  %vm1548_vm4 = vcmp.lt.s32.totalorder %v1547_v5, 0  ;;  %v838_v27 = vshrl.u32 %v1857_v54, %v829_v6  ;;  %v564_v30 = vcvt.s32.f32 %v557_v14 }
 0x107   : > { %v2231_v18 = vsel %vm1548_vm4, 0, %v1547_v5  ;;  %v2234_v20 = vshrl.u32 %v647_v17, 30  ;;  %v827_v42 = vshrl.u32 %v826_v60, 5  ;;  %v837_v46 = vshll.u32 %v1856_v52, %v828_v2 }
 0x108   : > { %v562_v28 = vand.u32 2147483647, %v561_v16  ;;  %v786_v48 = vsub.s32 4294967266, %v2231_v18  ;;  %v833_v39 = vor.u32 %v832_v35, %v831_v22  ;;  %v836_v33 = vor.u32 %v835_v44, %v834_v26 }
 0x109   : > { %v649_v50 = vshll.u32 %v2234_v20, 30  ;;  %v840_v40 = vshll.u32 %v1857_v54, %v828_v2  ;;  %v841_v55 = vshrl.u32 %v1858_v56, %v829_v6  ;;  %v843_v41 = vshll.u32 %v1858_v56, %v828_v2 }
 0x10a   : > { %v844_v38 = vshrl.u32 %v1859_v63, %v829_v6  ;;  %vm484_vm5 = vcmp.lt.s32.totalorder %v2064_v10, 0  ;;  %v839_v59 = vor.u32 %v838_v27, %v837_v46  ;;  %v862_v60 = vshll.u32 %v822_v19, 8 }
 0x10b   : > { %v650_v58 = vsub.s32 %v646_v32, %v649_v50  ;;  %v565_v61 = vmul.f32 %v564_v30, %v562_v28  ;;  %v842_v62 = vor.u32 %v841_v55, %v840_v40  ;;  %vm846_vm6 = vcmp.lt.s32.totalorder %v827_v42, 1 }
 0x10c   : > { %v845_v0 = vor.u32 %v844_v38, %v843_v41  ;;  %v782_v36 = vsub.s32 32, %v2231_v18  ;;  %v830_v3 = vshrl.u32 %v1854_v47, %v829_v6  ;;  %vm849_vm7 = vcmp.lt.s32.totalorder %v827_v42, 4 }
 0x10d   : > { %v652_v1 = vsub.s32 0, %v650_v58  ;;  %v787_v53 = vadd.s32 127, %v786_v48  ;;  %vm848_vm8 = vcmp.lt.s32.totalorder %v827_v42, 3  ;;  %v854_v2 = vsel %vm846_vm6, %v833_v39, %v836_v33 }
 0x10e   : > { %v855_v4 = vsel %vm849_vm7, %v842_v62, 920167782  ;;  %vm847_vm9 = vcmp.lt.s32.totalorder %v827_v42, 2  ;;  %v851_v5 = vsel %vm849_vm7, %v839_v59, 2102212464  ;;  %v566_v14 = vxor.u32 2147483648, %v565_v61 }
 0x10f   : > { %v1542_v43 = vmin.u32 %v652_v1, %v650_v58  ;;  %v856_v32 = vsel %vm848_vm8, %v839_v59, %v855_v4  ;;  %v858_v17 = vsel %vm846_vm6, %v836_v33, %v839_v59  ;;  %v859_v35 = vsel %vm849_vm7, %v845_v0, 1326507024 }
 0x110   : > { %v857_v16 = vsel %vm847_vm9, %v854_v2, %v856_v32  ;;  %v766_v19 = vadd.s32 %v2160_v23, %v2168_v29  ;;  %v850_v44 = vsel %vm846_vm6, %v830_v3, %v833_v39  ;;  %v860_v22 = vsel %vm848_vm8, %v842_v62, %v859_v35 }
 0x111   : > { %v654_v6 = vclz %v1542_v43  ;;  %v852_v26 = vsel %vm848_vm8, %v836_v33, %v851_v5  ;;  %v861_v27 = vsel %vm847_vm9, %v858_v17, %v860_v22  ;;  %v788_v46 = vshll.u32 %v787_v53, 23 }
 0x112   : > { %v2256_v28 = vmul.u32.u64.low %v862_v60, %v857_v16  ;;  %v2257_v30 = vmul.u32.u64.high %v862_v60, %v857_v16, %v2256_v28  ;;  %v2260_v50 = vmul.u32.u64.low %v862_v60, %v861_v27  ;;  %v2261_v40 = vmul.u32.u64.high %v862_v60, %v861_v27, %v2260_v50 }
 0x113   : > { %v1543_v48 = vadd.s32 4294967294, %v654_v6  ;;  %v567_v55 = vsel %vm484_vm5, %v566_v14, %v565_v61  ;;  %v784_v23 = vshrl.u32 %v766_v19, %v782_v36  ;;  %v853_v29 = vsel %vm847_vm9, %v850_v44, %v852_v26 }
 0x114   : > { %vm2268_vm11 = vcmp.le.f32.partialorder %v482_v13, 0.7853982  ;;  %v783_v33 = vshll.u32 %v2205_v45, %v2231_v18  ;;  %v642_v41 = vadd.s32 %v2210_v51, %v2217_v57  ;;  %v872_v59 = vadd.s32 1, %v2257_v30 }
 0x115   : > { %vm1544_vm10 = vcmp.lt.s32.totalorder %v1543_v48, 0  ;;  %v789_v61 = vor.u32 4788187, %v788_v46  ;;  %v570_v42 = vsel %vm2268_vm11, %v2064_v10, %v567_v55  ;;  %v869_v36 = vmul.u32 %v862_v60, %v853_v29 }
 0x116   : > { %v657_v38 = vsel %vm1544_vm10, 0, %v1543_v48  ;;  %v785_v13 = vor.u32 %v784_v23, %v783_v33  ;;  %vm871_vm12 = vc.u32 %v2261_v40, %v2256_v28  ;;  %v568_v45 = vsub.s32 4, %v2171_v31 }
 0x117   : > { %v658_v62 = vsub.s32 32, %v657_v38  ;;  %v662_v0 = vsub.s32 4294967266, %v657_v38  ;;  %v659_v18 = vshll.u32 %v650_v58, %v657_v38  ;;  %v873_v57 = vsel %vm871_vm12, %v872_v59, %v2257_v30 }
 0x118   : > { %v874_v3 = vadd.s32 %v873_v57, %v869_v36  ;;  %1712 = vcosq.f32 %v570_v42  ;;  %v790_v53 = vand.u32 2147483647, %v789_v61  ;;  %v792_v5 = vcvt.s32.f32 %v785_v13 }
 0x119   : > { %v660_v1 = vshrl.u32 %v642_v41, %v658_v62  ;;  %v663_v51 = vadd.s32 127, %v662_v0  ;;  %1714 = vsinq.f32 %v570_v42  ;;  %v569_v60 = vsel %vm484_vm5, %v568_v45, %v2171_v31 }
 0x11a   : > { %v875_v43 = vadd.s32 536870912, %v874_v3  ;;  %v1860_v14 = vmov 0.0   ;;  %v793_v16 = vmul.f32 %v792_v5, %v790_v53  ;;  %v571_v6 = vsel %vm2268_vm11, 0, %v569_v60 }
 0x11b   : > { %v661_v2 = vor.u32 %v660_v1, %v659_v18  ;;  %v664_v4 = vshll.u32 %v663_v51, 23  ;;  %1583 = vmatprep.subr.bf16.mxu0 %v1860_v14  ;;  %1601 = vmatprep.subr.bf16.mxu1 %v1860_v14  ;;  %v672_v26 = vsub.s32 4, %v2234_v20  ;;  %v575_v30 = vadd.s32 3, %v571_v6 }
 0x11c   : > { %v2289_v58 = vshrl.u32 %v875_v43, 30  ;;  %v794_v31 = vxor.u32 2147483648, %v793_v16  ;;  %vm588_vm13 = vcmp.lt.s32.totalorder %v2080_v21, 0  ;;  %vm712_vm14 = vcmp.lt.s32.totalorder %v2067_v11, 0 }
 0x11d   : > { %v665_v32 = vor.u32 4788187, %v664_v4  ;;  %v668_v35 = vcvt.s32.f32 %v661_v2  ;;  %vm2299_vm15 = vcmp.le.f32.partialorder %v586_v25, 0.7853982  ;;  %v673_v39 = vsel %vm588_vm13, %v672_v26, %v2234_v20 }
 0x11e   : > { %v877_v19 = vshll.u32 %v2289_v58, 30  ;;  %v795_v33 = vsel %vm712_vm14, %v794_v31, %v793_v16  ;;  %v576_v41 = vand.u32 3, %v575_v30  ;;  %v675_v25 = vsel %vm2299_vm15, 0, %v673_v39 }
 0x11f   : > { %v666_v17 = vand.u32 2147483647, %v665_v32  ;;  %vm2313_vm0 = vcmp.le.f32.partialorder %v710_v15, 0.7853982  ;;  %v679_v45 = vadd.s32 3, %v675_v25  ;;  %v796_v1 = vsub.s32 4, %v2202_v9 }
 0x120   : > { %v878_v22 = vsub.s32 %v874_v3, %v877_v19  ;;  %vm578_vm1 = vcmp.eq.s32.totalorder %v576_v41, 0  ;;  %vm581_vm2 = vcmp.eq.s32.totalorder %v576_v41, 2  ;;  %v798_v42 = vsel %vm2313_vm0, %v2067_v11, %v795_v33  ;;  %v2327_v19 = vpop.permute.xlu1 %694 }
 0x121   : > { %v669_v44 = vmul.f32 %v668_v35, %v666_v17  ;;  %v870_v51 = vadd.s32 %v2256_v28, %v2261_v40  ;;  %vm577_vm4 = vcmp.lt.s32.totalorder %v576_v41, 2  ;;  %v680_v43 = vand.u32 3, %v679_v45 }
 0x122   : > { %v1713_v46 = vpop.eup %1712  ;;  %v880_v48 = vsub.s32 0, %v878_v22  ;;  %vm574_vm5 = vweird.f32 %v2064_v10  ;;  %v797_v28 = vsel %vm712_vm14, %v796_v1, %v2202_v9  ;;  %vm678_vm9 = vweird.f32 %v2080_v21 }
 0x123   : > { %v670_v27 = vxor.u32 2147483648, %v669_v44  ;;  %v1715_v50 = vpop.eup %1714  ;;  %v582_v62 = vxor.u32 2147483648, %v1713_v46  ;;  %vm685_vm6 = vcmp.eq.s32.totalorder %v680_v43, 2  ;;  %v799_v10 = vsel %vm2313_vm0, 0, %v797_v28 }
 0x124   : > { %v1550_v23 = vmin.u32 %v880_v48, %v878_v22  ;;  %v579_v61 = vxor.u32 2147483648, %v1715_v50  ;;  %vm682_vm7 = vcmp.eq.s32.totalorder %v680_v43, 0  ;;  %vm681_vm8 = vcmp.lt.s32.totalorder %v680_v43, 2  ;;  %v700_v33 = vpop.permute.xlu1 %699 }
 0x125   : > { %v671_v55 = vsel %vm588_vm13, %v670_v27, %v669_v44  ;;  %v583_v36 = vsel %vm581_vm2, %v582_v62, %v1715_v50  ;;  %v900_v48 = vsub.s32 4, %v2289_v58  ;;  %vm816_vm10 = vcmp.lt.s32.totalorder %v2093_v34, 0 }
 0x126   : > { %v674_v38 = vsel %vm2299_vm15, %v2080_v21, %v671_v55  ;;  %v882_v59 = vclz %v1550_v23  ;;  %v580_v13 = vsel %vm578_vm1, %v1713_v46, %v579_v61  ;;  %v803_v23 = vadd.s32 3, %v799_v10  ;;  %v1010_v10 = vld [vmem:[%s2565_s5 + $0x8] sm:$0xff]  ;;  %v1710_v21 = vld [vmem:[%s2564_s4] sm:$0xff]  }
 0x127   : > { %1716 = vcosq.f32 %v674_v38  ;;  %v584_v3 = vsel %vm577_vm4, %v580_v13, %v583_v36  ;;  %vm2337_vm11 = vcmp.le.f32.partialorder %v814_v37, 0.7853982  ;;  %v901_v61 = vsel %vm816_vm10, %v900_v48, %v2289_v58 }
 0x128   : > { %1718 = vsinq.f32 %v674_v38  ;;  %v1551_v0 = vadd.s32 4294967294, %v882_v59  ;;  %v585_v16 = vsel %vm574_vm5, nan, %v584_v3  ;;  %v804_v25 = vand.u32 3, %v803_v23 }
 0x129   : > { %1720 = vcosq.f32 %v798_v42  ;;  %v690_v44 = vmul.f32 %v585_v16, %v585_v16  ;;  %v903_v37 = vsel %vm2337_vm11, 0, %v901_v61  ;;  %vm802_vm15 = vweird.f32 %v2067_v11 }
 0x12a   : > { %vm1552_vm3 = vcmp.lt.s32.totalorder %v1551_v0, 0  ;;  %1722 = vsinq.f32 %v798_v42  ;;  %vm806_vm12 = vcmp.eq.s32.totalorder %v804_v25, 0  ;;  %vm809_vm13 = vcmp.eq.s32.totalorder %v804_v25, 2 }
 0x12b   : > { %v885_v18 = vsel %vm1552_vm3, 0, %v1551_v0  ;;  %v702_v55 = vmul.f32 %v2327_v19, %v690_v44  ;;  %vm805_vm14 = vcmp.lt.s32.totalorder %v804_v25, 2  ;;  %vm906_vm3 = vweird.f32 %v2093_v34  ;;  %v1314_v44 = vld [vmem:[%s2569_s9] sm:$0xff] }
 0x12c   : > { %v886_v15 = vsub.s32 32, %v885_v18  ;;  %v890_v57 = vsub.s32 4294967266, %v885_v18  ;;  %v887_v53 = vshll.u32 %v878_v22, %v885_v18  ;;  %v907_v18 = vadd.s32 3, %v903_v37 }
 0x12d   : > { %v704_v62 = vadd.f32 %v702_v55, %v2057_v7  ;;  %vm1867_vm4 = vmmov 0   ;;  %vm936_vm5 = vcmask 1022976  }
 0x12e   : > { %v888_v2 = vshrl.u32 %v870_v51, %v886_v15  ;;  %v891_v4 = vadd.s32 127, %v890_v57  ;;  %v908_v51 = vand.u32 3, %v907_v18  ;;  %1597 = vmatprep.mubr.msk.bf16.mxu0 %vm1867_vm4, %v1860_v14  ;;  %1603 = vmatprep.mubr.msk.bf16.mxu1 %vm1867_vm4, %v1860_v14 }
 0x130   : > { %v889_v32 = vor.u32 %v888_v2, %v887_v53  ;;  %v892_v60 = vshll.u32 %v891_v4, 23  ;;  %vm913_vm0 = vcmp.eq.s32.totalorder %v908_v51, 2  ;;  %vm910_vm1 = vcmp.eq.s32.totalorder %v908_v51, 0 }
 0x131   : > { %v1717_v5 = vpop.eup %1716  ;;  %vm909_vm2 = vcmp.lt.s32.totalorder %v908_v51, 2 }
 0x132   : > { %v1719_v40 = vpop.eup %1718  ;;  %v686_v17 = vxor.u32 2147483648, %v1717_v5  ;;  %v893_v35 = vor.u32 4788187, %v892_v60  ;;  %v896_v31 = vcvt.s32.f32 %v889_v32 }
 0x133   : > { %v683_v6 = vxor.u32 2147483648, %v1719_v40  ;;  %v1721_v50 = vpop.eup %1720 }
 0x134   : > { %v687_v22 = vsel %vm685_vm6, %v686_v17, %v1719_v40  ;;  %v894_v26 = vand.u32 2147483647, %v893_v35  ;;  %v1723_v41 = vpop.eup %1722  ;;  %v810_v13 = vxor.u32 2147483648, %v1721_v50  ;;  %vm948_vm6 = vcmask 998400  }
 0x135   : > { %v684_v27 = vsel %vm682_vm7, %v1717_v5, %v683_v6  ;;  %v807_v42 = vxor.u32 2147483648, %v1723_v41  ;;  %v1073_v6 = vld [vmem:[%s2567_s7] sm:$0xff]  ;;  %vm960_vm7 = vcmask 973824  }
 0x136   : > { %v688_v9 = vsel %vm681_vm8, %v684_v27, %v687_v22  ;;  %v897_v30 = vmul.f32 %v896_v31, %v894_v26  ;;  %v811_v45 = vsel %vm809_vm13, %v810_v13, %v1723_v41  ;;  %v1072_v22 = vld [vmem:[%s2566_s6 + $0x8] sm:$0xff]  ;;  %vm972_vm8 = vcmask 949248  }
 0x137   : > { %v689_v46 = vsel %vm678_vm9, nan, %v688_v9  ;;  %v808_v58 = vsel %vm806_vm12, %v1721_v50, %v807_v42  ;;  %v1074_v26 = vld [vmem:[%s2567_s7 + $0x8] sm:$0xff]  ;;  %vm984_vm9 = vcmask 924672  }
 0x138   : > { %v691_v29 = vmul.f32 %v689_v46, %v689_v46  ;;  %v898_v39 = vxor.u32 2147483648, %v897_v30  ;;  %v812_v1 = vsel %vm805_vm14, %v808_v58, %v811_v45 }
 0x139   : > { %v813_v57 = vsel %vm802_vm15, nan, %v812_v1 }
 0x13a   : > { %v703_v38 = vmul.f32 %v700_v33, %v691_v29  ;;  %v899_v59 = vsel %vm816_vm10, %v898_v39, %v897_v30  ;;  %v918_v4 = vmul.f32 %v813_v57, %v813_v57  ;;  %vm996_vm10 = vcmask 900096  }
 0x13b   : > { %v902_v20 = vsel %vm2337_vm11, %v2093_v34, %v899_v59  ;;  %v1009_v34 = vld [vmem:[%s2565_s5] sm:$0xff]  ;;  %vm1026_vm11 = vcmask 916480  }
 0x13c   : > { %v705_v0 = vadd.f32 %v703_v38, %v2069_v12  ;;  %1724 = vcosq.f32 %v902_v20  ;;  %v920_v60 = vmul.f32 %v918_v4, %v2327_v19  ;;  %v1071_v19 = vld [vmem:[%s2566_s6] sm:$0xff] }
 0x13d   : > { %1726 = vsinq.f32 %v902_v20 }
 0x13e   : > { %v706_v36 = vpack.c.bf16 %v705_v0, %v704_v62  ;;  %v922_v40 = vadd.f32 %v920_v60, %v2061_v8 }
 0x140   : > { %932 = vrot.lane.b32.xlu0 %v706_v36, %s1861_s20  ;;  %1584 = vmatpush3.bf16.msra.mxu0 %v706_v36 }
 0x141   : > { %1585 = vmatprep.subr.bf16.mxu0 %v1860_v14 }
 0x144   : > { %944 = vrot.lane.b32.xlu0 %v706_v36, %s1862_s22 }
 0x146   : > { %v1725_v15 = vpop.eup %1724 }
 0x147   : > { %v1727_v3 = vpop.eup %1726  ;;  %v914_v53 = vxor.u32 2147483648, %v1725_v15 }
 0x148   : > { %956 = vrot.lane.b32.xlu0 %v706_v36, %s1863_s28  ;;  %v911_v2 = vxor.u32 2147483648, %v1727_v3 }
 0x149   : > { %v915_v43 = vsel %vm913_vm0, %v914_v53, %v1727_v3 }
 0x14a   : > { %v912_v5 = vsel %vm910_vm1, %v1725_v15, %v911_v2 }
 0x14b   : > { %v916_v32 = vsel %vm909_vm2, %v912_v5, %v915_v43 }
 0x14c   : > { %968 = vrot.lane.b32.xlu0 %v706_v36, %s1864_s23  ;;  %v917_v11 = vsel %vm906_vm3, nan, %v916_v32 }
 0x14d   : > { %v919_v16 = vmul.f32 %v917_v11, %v917_v11 }
 0x14f   : > { %v921_v28 = vmul.f32 %v919_v16, %v700_v33 }
 0x150   : > { %980 = vrot.lane.b32.xlu0 %v706_v36, %s1865_s10 }
 0x151   : > { %v923_v17 = vadd.f32 %v921_v28, %v2084_v24 }
 0x153   : > { %v924_v35 = vpack.c.bf16 %v923_v17, %v922_v40 }
 0x154   : > { %992 = vrot.lane.b32.xlu0 %v706_v36, %s1866_s11 }
 0x155   : > { %934 = vrot.lane.b32.xlu1 %v924_v35, %s1861_s20  ;;  %s1572_s20 = sshll.u32 %s1839_s16, 8  ;;  %s1403_s16 = scalar_lea.sflag [#allocation7], %s2033_s13 }
 0x158   : > { %1013 = vperm.xlu0 %1708, %v1009_v34  }
 0x159   : > { %946 = vrot.lane.b32.xlu1 %v924_v35, %s1862_s22  ;;  %s459_s22 = scalar_lea.vmem [#allocation8], %s2036_s21 }
 0x15a   : > { %s1417_s12 = sshll.u32 %s459_s22, 4  ;;  %s2510_s12 = int_to_ptr.vmem [resolvable:$true] %s1417_s12 }
 0x15b   : > { %s1765_s21 = scalar_lea.vmem %s2510_s12, 256 }
 0x15c   : > { %1077 = vperm.xlu0 %1708, %v1071_v19   ;;  %p1766_p4 = scmp.ne.s32.totalorder %s2510_s12, %s1765_s21 }
 0x15d   : > { %958 = vrot.lane.b32.xlu1 %v924_v35, %s1863_s28 }
 0x15e   : > { %p1767_p9 = pnand %p1766_p4, %p2597_p8 }
 0x160   : > { %1299 = vperm.xlu0 %1708, %v1073_v6   ;;  %p1768_p11 = pneg %p1767_p9 }
 0x161   : > { %970 = vrot.lane.b32.xlu1 %v924_v35, %s1864_s23  ;;  %s2596_s23 = sld [smem:[#allocation15_spill]] }
 0x164   : > { %1318 = vperm.xlu0 %1708, %v1314_v44  }
 0x165   : > { %982 = vrot.lane.b32.xlu1 %v924_v35, %s1865_s10  ;;  %s1868_s10 = smov [#allocation8]  }
 0x167   : > { %s2508_s29 = scalar_lea.hbm %s2596_s23, %s1572_s20 }
 0x168   : > { %1378 = vrot.lane.b32.xlu0 %v2057_v7, %s1863_s28  ;;  %v1315_v7 = vld [vmem:[%s2569_s9 + $0x8] sm:$0xff] }
 0x169   : > { %994 = vrot.lane.b32.xlu1 %v924_v35, %s1866_s11  ;;  %s1769_s11 = sshll.u32 %s1868_s10, 4  ;;  %s1770_s11 = int_to_ptr.vmem [resolvable:$false] %s1769_s11 }
 0x16a   : > { %p1772_p12 = scmp.lt.s32.totalorder %s2510_s12, %s1770_s11 }
 0x16c   : > { %1391 = vrot.lane.b32.xlu0 %v2061_v8, %s1863_s28 }
 0x16d   : > { %1018 = vperm.xlu1 %1709, %v1010_v10  }
 0x171   : > { %1082 = vperm.xlu1 %1709, %v1072_v22  }
 0x175   : > { %1304 = vperm.xlu1 %1709, %v1074_v26  }
 0x179   : > { %1323 = vperm.xlu1 %1709, %v1315_v7  }
 0x17d   : > { %1380 = vrot.lane.b32.xlu1 %v2069_v12, %s1863_s28 }
 0x181   : > { %1393 = vrot.lane.b32.xlu1 %v2084_v24, %s1863_s28  ;;  %s1771_s28 = scalar_lea.vmem %s1770_s11, 512 }
 0x182   : > { %p1773_p7 = scmp.lt.s32.totalorder %s1771_s28, %s1765_s21 }
 0x184   : > { %p1774_p10 = por %p1773_p7, %p1772_p12 }
 0x186   : > { %p1775_p13 = pnand %p1774_p10, %p1768_p11 }
 0x1b2   : > { %v933_v8 = vpop.permute.xlu0 %932 }
 0x1b6   : > { %v945_v31 = vpop.permute.xlu0 %944 }
 0x1ba   : > { %v957_v9 = vpop.permute.xlu0 %956 }
 0x1be   : > { %v969_v50 = vpop.permute.xlu0 %968 }
 0x1c2   : > { %v981_v23 = vpop.permute.xlu0 %980 }
 0x1c6   : > { %v993_v41 = vpop.permute.xlu0 %992 }
 0x1c7   : > { %v935_v27 = vpop.permute.xlu1 %934 }
 0x1c8   : > { %v937_v30 = vsel %vm936_vm5, %v933_v8, %v935_v27 }
 0x1c9   : > { %1586 = vmatpush3.bf16.msra.mxu0 %v937_v30 }
 0x1ca   : > { %1587 = vmatprep.subr.bf16.mxu0 %v1860_v14 }
 0x1cb   : > { %v947_v46 = vpop.permute.xlu1 %946 }
 0x1cc   : > { %v949_v48 = vsel %vm948_vm6, %v945_v31, %v947_v46 }
 0x1cd   : > { %1588 = vmatpush3.bf16.msra.mxu0 %v949_v48 }
 0x1ce   : > { %1589 = vmatprep.subr.bf16.mxu0 %v1860_v14 }
 0x1cf   : > { %v959_v12 = vpop.permute.xlu1 %958 }
 0x1d0   : > { %v961_v24 = vsel %vm960_vm7, %v957_v9, %v959_v12 }
 0x1d1   : > { %1590 = vmatpush3.bf16.msra.mxu0 %v961_v24 }
 0x1d2   : > { %1591 = vmatprep.subr.bf16.mxu0 %v1860_v14 }
 0x1d3   : > { %v971_v55 = vpop.permute.xlu1 %970 }
 0x1d4   : > { %v973_v29 = vsel %vm972_vm8, %v969_v50, %v971_v55 }
 0x1d5   : > { %1592 = vmatpush3.bf16.msra.mxu0 %v973_v29 }
 0x1d6   : > { %1593 = vmatprep.subr.bf16.mxu0 %v1860_v14 }
 0x1d7   : > { %v983_v39 = vpop.permute.xlu1 %982  ;;  %v1014_v61 = vpop.permute.xlu0 %1013 }
 0x1d8   : > { %v985_v33 = vsel %vm984_vm9, %v981_v23, %v983_v39 }
 0x1d9   : > { %1594 = vmatpush3.bf16.msra.mxu0 %v985_v33 }
 0x1da   : > { %1595 = vmatprep.subr.bf16.mxu0 %v1860_v14 }
 0x1db   : > { %v995_v38 = vpop.permute.xlu1 %994  ;;  %v1078_v42 = vpop.permute.xlu0 %1077 }
 0x1dc   : > { %v997_v59 = vsel %vm996_vm10, %v993_v41, %v995_v38 }
 0x1dd   : > { %1596 = vmatpush3.bf16.msra.mxu0 %v997_v59 }
 0x1e0   : > { %1598 = vmatmul.mubr.msk.bf16.vlgmr.msra.gmra.mrb[0].mxu0 %vm1026_vm11, %v1710_v21 }
 0x1ec   : > { %v1019_v62 = vpop.permute.xlu1 %1018 }
 0x1f0   : > { %v1083_v58 = vpop.permute.xlu1 %1082 }
 0x2b3   : > { %v1064_v25 = vpop.f32.mrb[0].mxu0 }
 0x2b4   : > { %v2404_v0 = vadd.f32 %v1064_v25, %v1014_v61  ;;  %v1599_v20 = vpop.f32.mrb[1].mxu0 }
 0x2b5   : > { %v1067_v13 = vpop.f32.mrb[2].mxu0 }
 0x2b6   : > { %v2407_v36 = vmul.f32 %v1078_v42, %v2404_v0  ;;  %v2409_v14 = vadd.f32 %v1067_v13, %v1019_v62  ;;  %v1600_v37 = vpop.f32.mrb[3].mxu0 }
 0x2b8   : > { %v1087_v45 = vand.u32 2147483647, %v2407_v36  ;;  %v1090_v18 = vand.u32 2139095040, %v2407_v36  ;;  %v2414_v1 = vmul.f32 %v1083_v58, %v2409_v14  ;;  %vm1089_vm11 = vcmp.lt.s32.totalorder %v2407_v36, 0 }
 0x2ba   : > { %v1091_v51 = vshrl.u32 %v1090_v18, 23  ;;  %v1094_v15 = vand.u32 8388607, %v1087_v45  ;;  %v1194_v57 = vand.u32 2139095040, %v2414_v1  ;;  %v1191_v53 = vand.u32 2147483647, %v2414_v1 }
 0x2bc   : > { %v1555_v3 = vadd.s32 4294967169, %v1091_v51  ;;  %v1195_v2 = vshrl.u32 %v1194_v57, 23  ;;  %v1095_v43 = vor.u32 8388608, %v1094_v15  ;;  %v1198_v32 = vand.u32 8388607, %v1191_v53 }
 0x2be   : > { %v1097_v4 = vadd.s32 1, %v1555_v3  ;;  %v1559_v5 = vadd.s32 4294967169, %v1195_v2  ;;  %v2422_v40 = vshll.u32 %v1095_v43, 8  ;;  %v1199_v34 = vor.u32 8388608, %v1198_v32 }
 0x2c0   : > { %vm1098_vm12 = vcmp.gt.s32.totalorder %v1097_v4, 0  ;;  %v1201_v60 = vadd.s32 1, %v1559_v5  ;;  %v1239_v62 = vshll.u32 %v1199_v34, 8 }
 0x2c1   : > { %v1099_v11 = vsel %vm1098_vm12, %v1097_v4, 0  ;;  %vm1088_vm12 = vcmp.le.f32.partialorder %v1087_v45, 0.7853982 }
 0x2c2   : > { %v1100_v16 = vshrl.u32 %v1099_v11, 5  ;;  %v1101_v28 = vand.u32 31, %v1099_v11  ;;  %vm1202_vm13 = vcmp.gt.s32.totalorder %v1201_v60, 0 }
 0x2c3   : > { %v1203_v48 = vsel %vm1202_vm13, %v1201_v60, 0  ;;  %vm1193_vm13 = vcmp.lt.s32.totalorder %v2414_v1, 0 }
 0x2c4   : > { %v1102_v17 = vsub.s32 32, %v1101_v28  ;;  %v1104_v35 = vshll.u32 %v1854_v47, %v1101_v28  ;;  %v1107_v19 = vshll.u32 %v1855_v49, %v1101_v28  ;;  %v1110_v6 = vshll.u32 %v1856_v52, %v1101_v28 }
 0x2c5   : > { %v1113_v44 = vshll.u32 %v1857_v54, %v1101_v28  ;;  %v1116_v10 = vshll.u32 %v1858_v56, %v1101_v28  ;;  %vm1119_vm14 = vcmp.lt.s32.totalorder %v1100_v16, 1  ;;  %vm1121_vm15 = vcmp.lt.s32.totalorder %v1100_v16, 3 }
 0x2c6   : > { %v1105_v22 = vshrl.u32 %v1855_v49, %v1102_v17  ;;  %v1108_v26 = vshrl.u32 %v1856_v52, %v1102_v17  ;;  %v1111_v7 = vshrl.u32 %v1857_v54, %v1102_v17  ;;  %v1103_v8 = vshrl.u32 %v1854_v47, %v1102_v17 }
 0x2c7   : > { %v1114_v31 = vshrl.u32 %v1858_v56, %v1102_v17  ;;  %v1117_v27 = vshrl.u32 %v1859_v63, %v1102_v17  ;;  %vm1122_vm0 = vcmp.lt.s32.totalorder %v1100_v16, 4  ;;  %v1205_v24 = vand.u32 31, %v1203_v48 }
 0x2c8   : > { %v1106_v9 = vor.u32 %v1105_v22, %v1104_v35  ;;  %v1109_v30 = vor.u32 %v1108_v26, %v1107_v19  ;;  %v1112_v46 = vor.u32 %v1111_v7, %v1110_v6  ;;  %vm1120_vm1 = vcmp.lt.s32.totalorder %v1100_v16, 2 }
 0x2c9   : > { %v1115_v50 = vor.u32 %v1114_v31, %v1113_v44  ;;  %v1118_v12 = vor.u32 %v1117_v27, %v1116_v10  ;;  %v1206_v59 = vsub.s32 32, %v1205_v24  ;;  %v1204_v13 = vshrl.u32 %v1203_v48, 5 }
 0x2ca   : > { %v1123_v55 = vsel %vm1119_vm14, %v1103_v8, %v1106_v9  ;;  %v1124_v23 = vsel %vm1122_vm0, %v1112_v46, 2102212464  ;;  %v1127_v29 = vsel %vm1119_vm14, %v1106_v9, %v1109_v30  ;;  %v1131_v39 = vsel %vm1119_vm14, %v1109_v30, %v1112_v46 }
 0x2cb   : > { %v1125_v33 = vsel %vm1121_vm15, %v1109_v30, %v1124_v23  ;;  %v1128_v41 = vsel %vm1122_vm0, %v1115_v50, 920167782  ;;  %v1132_v38 = vsel %vm1122_vm0, %v1118_v12, 1326507024  ;;  %v1208_v15 = vshll.u32 %v1854_v47, %v1205_v24 }
 0x2cc   : > { %v1129_v21 = vsel %vm1121_vm15, %v1112_v46, %v1128_v41  ;;  %v1133_v61 = vsel %vm1121_vm15, %v1115_v50, %v1132_v38  ;;  %v1126_v25 = vsel %vm1120_vm1, %v1123_v55, %v1125_v33  ;;  %v1209_v57 = vshrl.u32 %v1855_v49, %v1206_v59 }
 0x2cd   : > { %v1130_v20 = vsel %vm1120_vm1, %v1127_v29, %v1129_v21  ;;  %v1134_v42 = vsel %vm1120_vm1, %v1131_v39, %v1133_v61  ;;  %v1211_v3 = vshll.u32 %v1855_v49, %v1205_v24  ;;  %v1212_v2 = vshrl.u32 %v1856_v52, %v1206_v59 }
 0x2ce   : > { %v2443_v37 = vmul.u32.u64.low %v2422_v40, %v1134_v42  ;;  %v2444_v58 = vmul.u32.u64.high %v2422_v40, %v1134_v42, %v2443_v37  ;;  %v2447_v18 = vmul.u32.u64.low %v2422_v40, %v1130_v20  ;;  %v2448_v51 = vmul.u32.u64.high %v2422_v40, %v1130_v20, %v2447_v18 }
 0x2cf   : > { %v1214_v4 = vshll.u32 %v1856_v52, %v1205_v24  ;;  %v1215_v43 = vshrl.u32 %v1857_v54, %v1206_v59  ;;  %v1217_v5 = vshll.u32 %v1857_v54, %v1205_v24  ;;  %v1218_v32 = vshrl.u32 %v1858_v56, %v1206_v59 }
 0x2d0   : > { %v1210_v11 = vor.u32 %v1209_v57, %v1208_v15  ;;  %v1213_v60 = vor.u32 %v1212_v2, %v1211_v3  ;;  %v1220_v16 = vshll.u32 %v1858_v56, %v1205_v24  ;;  %v1221_v28 = vshrl.u32 %v1859_v63, %v1206_v59 }
 0x2d1   : > { %v1142_v17 = vmul.u32 %v2422_v40, %v1126_v25  ;;  %vm1144_vm2 = vc.u32 %v2444_v58, %v2447_v18  ;;  %v1145_v49 = vadd.s32 1, %v2448_v51  ;;  %v1216_v52 = vor.u32 %v1215_v43, %v1214_v4 }
 0x2d2   : > { %v1207_v35 = vshrl.u32 %v1854_v47, %v1206_v59  ;;  %v1219_v34 = vor.u32 %v1218_v32, %v1217_v5  ;;  %v1222_v54 = vor.u32 %v1221_v28, %v1220_v16  ;;  %vm1223_vm3 = vcmp.lt.s32.totalorder %v1204_v13, 1 }
 0x2d3   : > { %v1146_v19 = vsel %vm1144_vm2, %v1145_v49, %v2448_v51  ;;  %vm1225_vm4 = vcmp.lt.s32.totalorder %v1204_v13, 3  ;;  %vm1226_vm5 = vcmp.lt.s32.totalorder %v1204_v13, 4  ;;  %v1231_v56 = vsel %vm1223_vm3, %v1210_v11, %v1213_v60 }
 0x2d4   : > { %v1147_v6 = vadd.s32 %v1146_v19, %v1142_v17  ;;  %v1228_v63 = vsel %vm1226_vm5, %v1216_v52, 2102212464  ;;  %v1232_v44 = vsel %vm1226_vm5, %v1219_v34, 920167782  ;;  %v1235_v40 = vsel %vm1223_vm3, %v1213_v60, %v1216_v52 }
 0x2d5   : > { %vm1224_vm6 = vcmp.lt.s32.totalorder %v1204_v13, 2  ;;  %v1227_v10 = vsel %vm1223_vm3, %v1207_v35, %v1210_v11  ;;  %v1233_v22 = vsel %vm1225_vm4, %v1216_v52, %v1232_v44  ;;  %v1236_v26 = vsel %vm1226_vm5, %v1222_v54, 1326507024 }
 0x2d6   : > { %v1148_v7 = vadd.s32 536870912, %v1147_v6  ;;  %v1229_v8 = vsel %vm1225_vm4, %v1213_v60, %v1228_v63  ;;  %v1234_v31 = vsel %vm1224_vm6, %v1231_v56, %v1233_v22  ;;  %v1237_v47 = vsel %vm1225_vm4, %v1219_v34, %v1236_v26 }
 0x2d7   : > { %v1238_v27 = vsel %vm1224_vm6, %v1235_v40, %v1237_v47  ;;  %v2467_v9 = vmul.u32.u64.low %v1239_v62, %v1234_v31  ;;  %v2468_v30 = vmul.u32.u64.high %v1239_v62, %v1234_v31, %v2467_v9  ;;  %v1230_v12 = vsel %vm1224_vm6, %v1227_v10, %v1229_v8 }
 0x2d8   : > { %v1149_v46 = vshrl.u32 %v1148_v7, 30  ;;  %v2470_v48 = vmul.u32.u64.low %v1239_v62, %v1238_v27  ;;  %v2471_v50 = vmul.u32.u64.high %v1239_v62, %v1238_v27, %v2470_v48  ;;  %v1246_v29 = vmul.u32 %v1239_v62, %v1230_v12 }
 0x2d9   : > { %v1249_v55 = vadd.s32 1, %v2468_v30  ;;  %v1143_v37 = vadd.s32 %v2447_v18, %v2444_v58  ;;  %vm2486_vm14 = vcmp.le.f32.partialorder %v1191_v53, 0.7853982  ;;  %vm1179_vm2 = vweird.f32 %v2407_v36 }
 0x2da   : > { %v1150_v24 = vshll.u32 %v1149_v46, 30  ;;  %vm1248_vm8 = vc.u32 %v2471_v50, %v2467_v9  ;;  %v1247_v52 = vadd.s32 %v2467_v9, %v2471_v50  ;;  %v1173_v34 = vsub.s32 4, %v1149_v46 }
 0x2db   : > { %v1250_v39 = vsel %vm1248_vm8, %v1249_v55, %v2468_v30  ;;  %vm1283_vm6 = vweird.f32 %v2414_v1  ;;  %vm1331_vm8 = vcmask 130048  }
 0x2dc   : > { %v1151_v23 = vsub.s32 %v1147_v6, %v1150_v24  ;;  %v1251_v41 = vadd.s32 %v1250_v39, %v1246_v29  ;;  %v1174_v10 = vsel %vm1089_vm11, %v1173_v34, %v1149_v46 }
 0x2dd   : > { %v1176_v26 = vsel %vm1088_vm12, 0, %v1174_v10 }
 0x2de   : > { %v1153_v33 = vsub.s32 0, %v1151_v23  ;;  %v1252_v59 = vadd.s32 536870912, %v1251_v41  ;;  %v1180_v27 = vadd.s32 3, %v1176_v26 }
 0x2e0   : > { %v1556_v38 = vmin.u32 %v1153_v33, %v1151_v23  ;;  %v1253_v61 = vshrl.u32 %v1252_v59, 30  ;;  %v1181_v50 = vand.u32 3, %v1180_v27 }
 0x2e2   : > { %v1155_v21 = vclz %v1556_v38  ;;  %v1254_v20 = vshll.u32 %v1253_v61, 30  ;;  %v1277_v47 = vsub.s32 4, %v1253_v61  ;;  %vm1183_vm15 = vcmp.eq.s32.totalorder %v1181_v50, 0 }
 0x2e3   : > { %vm1186_vm0 = vcmp.eq.s32.totalorder %v1181_v50, 2  ;;  %vm1182_vm1 = vcmp.lt.s32.totalorder %v1181_v50, 2 }
 0x2e4   : > { %v1557_v25 = vadd.s32 4294967294, %v1155_v21  ;;  %v1255_v13 = vsub.s32 %v1251_v41, %v1254_v20  ;;  %v1278_v46 = vsel %vm1193_vm13, %v1277_v47, %v1253_v61 }
 0x2e5   : > { %v1280_v29 = vsel %vm2486_vm14, 0, %v1278_v46 }
 0x2e6   : > { %vm1558_vm9 = vcmp.lt.s32.totalorder %v1557_v25, 0  ;;  %v1257_v15 = vsub.s32 0, %v1255_v13  ;;  %v1284_v33 = vadd.s32 3, %v1280_v29 }
 0x2e7   : > { %v1158_v42 = vsel %vm1558_vm9, 0, %v1557_v25  ;;  %vm1399_vm9 = vcmask 1048504  }
 0x2e8   : > { %v1159_v51 = vsub.s32 32, %v1158_v42  ;;  %v1163_v62 = vsub.s32 4294967266, %v1158_v42  ;;  %v1160_v57 = vshll.u32 %v1151_v23, %v1158_v42  ;;  %v1560_v4 = vmin.u32 %v1257_v15, %v1255_v13 }
 0x2e9   : > { %v1285_v38 = vand.u32 3, %v1284_v33 }
 0x2ea   : > { %v1161_v3 = vshrl.u32 %v1143_v37, %v1159_v51  ;;  %v1164_v2 = vadd.s32 127, %v1163_v62  ;;  %v1259_v32 = vclz %v1560_v4  ;;  %v1300_v62 = vpop.permute.xlu0 %1299 }
 0x2eb   : > { %vm1290_vm3 = vcmp.eq.s32.totalorder %v1285_v38, 2  ;;  %vm1287_vm4 = vcmp.eq.s32.totalorder %v1285_v38, 0  ;;  %vm1286_vm5 = vcmp.lt.s32.totalorder %v1285_v38, 2 }
 0x2ec   : > { %v1162_v43 = vor.u32 %v1161_v3, %v1160_v57  ;;  %v1165_v5 = vshll.u32 %v1164_v2, 23  ;;  %v1561_v60 = vadd.s32 4294967294, %v1259_v32  ;;  %v1305_v2 = vpop.permute.xlu1 %1304  ;;  %v1711_v32 = vld [vmem:[%s2568_s8] sm:$0xff]  }
 0x2ee   : > { %v1166_v11 = vor.u32 4788187, %v1165_v5  ;;  %v1169_v28 = vcvt.s32.f32 %v1162_v43  ;;  %vm1562_vm10 = vcmp.lt.s32.totalorder %v1561_v60, 0 }
 0x2ef   : > { %v1262_v49 = vsel %vm1562_vm10, 0, %v1561_v60 }
 0x2f0   : > { %v1167_v16 = vand.u32 2147483647, %v1166_v11  ;;  %v1263_v58 = vsub.s32 32, %v1262_v49  ;;  %v1267_v18 = vsub.s32 4294967266, %v1262_v49  ;;  %v1264_v54 = vshll.u32 %v1255_v13, %v1262_v49  ;;  %v1324_v11 = vpop.permute.xlu1 %1323 }
 0x2f2   : > { %v1170_v17 = vmul.f32 %v1169_v28, %v1167_v16  ;;  %v1265_v19 = vshrl.u32 %v1247_v52, %v1263_v58  ;;  %v1268_v56 = vadd.s32 127, %v1267_v18 }
 0x2f4   : > { %v1171_v35 = vxor.u32 2147483648, %v1170_v17  ;;  %v1266_v44 = vor.u32 %v1265_v19, %v1264_v54  ;;  %v1269_v40 = vshll.u32 %v1268_v56, 23  ;;  %v1381_v16 = vpop.permute.xlu1 %1380 }
 0x2f6   : > { %v1172_v6 = vsel %vm1089_vm11, %v1171_v35, %v1170_v17  ;;  %v1270_v22 = vor.u32 4788187, %v1269_v40  ;;  %v1273_v8 = vcvt.s32.f32 %v1266_v44 }
 0x2f7   : > { %v1175_v63 = vsel %vm1088_vm12, %v2407_v36, %v1172_v6 }
 0x2f8   : > { %1728 = vcosq.f32 %v1175_v63  ;;  %v1271_v7 = vand.u32 2147483647, %v1270_v22 }
 0x2f9   : > { %1730 = vsinq.f32 %v1175_v63 }
 0x2fa   : > { %v1274_v31 = vmul.f32 %v1273_v8, %v1271_v7 }
 0x2fc   : > { %v1275_v9 = vxor.u32 2147483648, %v1274_v31 }
 0x2fe   : > { %v1276_v30 = vsel %vm1193_vm13, %v1275_v9, %v1274_v31 }
 0x2ff   : > { %v1279_v12 = vsel %vm2486_vm14, %v2414_v1, %v1276_v30  ;;  %v1319_v1 = vpop.permute.xlu0 %1318 }
 0x300   : > { %1732 = vcosq.f32 %v1279_v12 }
 0x301   : > { %1734 = vsinq.f32 %v1279_v12 }
 0x302   : > { %v1729_v48 = vpop.eup %1728 }
 0x303   : > { %v1731_v24 = vpop.eup %1730  ;;  %v1187_v55 = vxor.u32 2147483648, %v1729_v48  ;;  %v1379_v60 = vpop.permute.xlu0 %1378 }
 0x304   : > { %v1184_v23 = vxor.u32 2147483648, %v1731_v24 }
 0x305   : > { %v1188_v39 = vsel %vm1186_vm0, %v1187_v55, %v1731_v24 }
 0x306   : > { %v1185_v53 = vsel %vm1183_vm15, %v1729_v48, %v1184_v23 }
 0x307   : > { %v1189_v41 = vsel %vm1182_vm1, %v1185_v53, %v1188_v39  ;;  %v1392_v17 = vpop.permute.xlu0 %1391 }
 0x308   : > { %v1190_v21 = vsel %vm1179_vm2, nan, %v1189_v41 }
 0x309   : > { %v1295_v42 = vmul.f32 %v1190_v21, %v1190_v21 }
 0x30a   : > { %v1733_v59 = vpop.eup %1732 }
 0x30b   : > { %v1735_v61 = vpop.eup %1734  ;;  %v1291_v25 = vxor.u32 2147483648, %v1733_v59  ;;  %v1307_v57 = vmul.f32 %v1300_v62, %v1295_v42 }
 0x30c   : > { %v1288_v20 = vxor.u32 2147483648, %v1735_v61 }
 0x30d   : > { %v1292_v13 = vsel %vm1290_vm3, %v1291_v25, %v1735_v61  ;;  %v1309_v4 = vadd.f32 %v1307_v57, %v2404_v0 }
 0x30e   : > { %v1289_v37 = vsel %vm1287_vm4, %v1733_v59, %v1288_v20 }
 0x30f   : > { %v1293_v51 = vsel %vm1286_vm5, %v1289_v37, %v1292_v13 }
 0x310   : > { %v1294_v15 = vsel %vm1283_vm6, nan, %v1293_v51 }
 0x311   : > { %v1296_v3 = vmul.f32 %v1294_v15, %v1294_v15 }
 0x313   : > { %v1308_v36 = vmul.f32 %v1305_v2, %v1296_v3 }
 0x315   : > { %v1310_v43 = vadd.f32 %v1308_v36, %v2409_v14  ;;  %v1394_v14 = vpop.permute.xlu1 %1393 }
 0x317   : > { %v1311_v5 = vpack.c.bf16 %v1310_v43, %v1309_v4 }
 0x319   : > { %1602 = vmatpush3.bf16.msra.mxu1 %v1311_v5 }
 0x31c   : > { %1604 = vmatmul.mubr.msk.bf16.vlgmr.msra.gmra.mrb[0].mxu1 %vm1331_vm8, %v1711_v32 }
 0x3ef   : > { %v1369_v28 = vpop.f32.mrb[0].mxu1 }
 0x3f0   : > { %v1370_v49 = vadd.f32 %v1369_v28, %v1319_v1  ;;  %v1605_v0 = vpop.f32.mrb[1].mxu1 }
 0x3f1   : > { %v1372_v52 = vpop.f32.mrb[2].mxu1 }
 0x3f2   : > { %v1384_v58 = vadd.f32 %v1379_v60, %v1370_v49  ;;  %v1397_v18 = vadd.f32 %v1392_v17, %v1370_v49  ;;  %v1373_v35 = vadd.f32 %v1372_v52, %v1324_v11  ;;  %v1606_v34 = vpop.f32.mrb[3].mxu1 }
 0x3f4   : > { %1387 = vst.msk [vmem:[%s459_s22] sm:$0xff] %vm960_vm7, %v1384_v58  ;;  %v1385_v54 = vadd.f32 %v1381_v16, %v1373_v35  ;;  %v1398_v19 = vadd.f32 %v1394_v14, %v1373_v35 }
 0x3f5   : > { %1400 = vst.msk [vmem:[%s459_s22] sm:$0xff] %vm1399_vm9, %v1397_v18 }
 0x3f6   : > { %1388 = vst.msk [vmem:[%s459_s22 + $0x8] sm:$0xff] %vm960_vm7, %v1385_v54 }
 0x3f7   : > { %1401 = vst.msk [vmem:[%s459_s22 + $0x8] sm:$0xff] %vm1399_vm9, %v1398_v19 }
 0x3f8   : > { %1778 = shalt.err (!%p1775_p13)
}
 0x3f9   : > { %s1779_s30 = scalar_lea.hbm %s2508_s29, 256  ;;  %s1783_s20 = scalar_lea.hbm %s2596_s23, 512 }
 0x3fa   : > { %p1780_p0 = scmp.ne.s32.totalorder %s2508_s29, %s1779_s30  ;;  %p1784_p1 = scmp.lt.u32.totalorder %s2508_s29, %s2596_s23 }
 0x3fb   : > { %p1785_p5 = scmp.lt.u32.totalorder %s1783_s20, %s1779_s30  ;;  %p1787_p4 = scmp.lt.u32.totalorder %s1779_s30, %s2508_s29 }
 0x3fc   : > { %p1781_p2 = pnand %p1780_p0, %p2597_p8 }
 0x3fd   : > { %p1786_p6 = por %p1785_p5, %p1784_p1 }
 0x3fe   : > { %p1782_p3 = pneg %p1781_p2 }
 0x3ff   : > { %p1788_p9 = por %p1787_p4, %p1786_p6 }
 0x401   : > { %p1789_p11 = pnand %p1788_p9, %p1782_p3 }
 0x403   : > { %1792 = shalt.err (!%p1789_p11)
}
 0x404   : > { %s1869_s24 = smov 128   ;;  %s1870_s21 = smov 8  }
 0x405   : > { %1633 = dma.vmem_to_hbm [thread:$0]  (%p2597_p8), %s2510_s12, 256, %s2508_s29, %s1403_s16, %s1869_s24, %s1869_s24, %s1870_s21  }
 0x406 PF: > { %s2598_s10 = sld [smem:[#allocation11_spill]]  ;;  %s2599_s11 = sld [smem:[#allocation14_spill]] }
 0x407   : > { %p2601_p7 = scmp.ge.s32.totalorder %s1847_s18, 2 }
 0x40c   : > { %s1432_s28 = sand.u32 1, %s2598_s10   ;;  %p2600_p12 = scmp.ne.s32.totalorder %s2599_s11, 0 }
 0x40d   : > { %s1433_s30 = scalar_lea.sflag [#allocation7], %s1432_s28 }
 0x40e   : > { %p1636_p10 = pnand %p2601_p7, %p2600_p12 }
 0x410   : > { %1822 = dma.done.wait (!%p1636_p10), %s1433_s30, 256  }
 0x411   : > { %1824 = vsyncadd (!%p1636_p10), %s1433_s30, 4294967040  ;;  %s26_s18 = sadd.s32 1, %s1847_s18   ;;  %s2602_s25 = sld [smem:[#allocation13_spill]] }
 0x412   : > { %p23_p13 = scmp.ge.s32.totalorder %s26_s18, 4   ;;  %s2603_s26 = sld [smem:[#allocation12_spill]] }
 0x413   : > { %s2604_s13 = smov %s1831_s14  ;;  %s2605_s14 = smov %s1835_s15 }
 0x414   : > { %s2607_s16 = smov %s1843_s17  ;;  %25 = sbr.rel (!%p23_p13) target bundleno = 8 (0x8), region = 151 }
 0x417   : > { %s2606_s15 = smov %s2602_s25 }
 0x418   : > { %s2608_s17 = smov %s2603_s26 }
 0x41b   :  { %1438 = vsyncpa [#allocation6], 1 }
 0x41c   :  { %1440 = vsyncpa [#allocation6 + $0x1], 1 }
 0x41d   :  { %1441 = vsyncpa [#allocation7], 1 }
 0x41e   :  { %1443 = vsyncpa [#allocation7 + $0x1], 1 }

</bundles_post_ra>
